<compile_context>
chip_gen: v7x
topology: tpu7x:2x2x1
jax: 0.10.0
libtpu: 0.0.40
codegen_flags: <defaults>
</compile_context>

<pallas_src>
import jax
import jax.numpy as jnp
import numpy as np
from jax.experimental import pallas as pl
from jax.experimental.pallas import tpu as pltpu

EPS = 1e-5


def _make_kernel(N, H, W, C):
    NH, WC = N * H, W * C
    inv_count = 1.0 / float(N * H * W)

    def kernel(x_ref, wb1_ref, g1_ref, b1_ref, wb2_ref, g2_ref, b2_ref, o_ref):
        f32 = jnp.float32

        # ---- constant helper matrices, built once per kernel invocation ----
        # Row-shift matrices (dy = -1 / +1) with per-image top/bottom zero
        # padding folded in:  (s_prev @ x)[r] = x[r-1]  (0 on each image's
        # first row), (s_next @ x)[r] = x[r+1] (0 on each image's last row).
        ri = jax.lax.broadcasted_iota(jnp.int32, (NH, NH), 0)
        ci = jax.lax.broadcasted_iota(jnp.int32, (NH, NH), 1)
        s_prev = jnp.where((ri - ci == 1) & (ri % H != 0), 1.0, 0.0).astype(f32)
        s_next = jnp.where((ci - ri == 1) & (ri % H != H - 1), 1.0, 0.0).astype(f32)

        # Channel-pooling matrix: (s @ pool)[w*C + c] = sum_w' s[w'*C + c],
        # i.e. per-channel totals broadcast back over all w lanes (lane-dense).
        li = jax.lax.broadcasted_iota(jnp.int32, (WC, WC), 0)
        lj = jax.lax.broadcasted_iota(jnp.int32, (WC, WC), 1)
        pool = jnp.where(li % C == lj % C, 1.0, 0.0).astype(f32)

        def conv3x3(inp, wb_ref):
            # inp: (NH, WC).  wb_ref: (3, WC, WC) block-banded weight, one band
            # per ky tap (dx taps + channel mixing already folded in).
            prev = jnp.dot(s_prev, inp, preferred_element_type=f32)   # row h-1
            nxt = jnp.dot(s_next, inp, preferred_element_type=f32)    # row h+1
            out = jnp.dot(prev, wb_ref[0], preferred_element_type=f32)
            out = out + jnp.dot(inp, wb_ref[1], preferred_element_type=f32)
            out = out + jnp.dot(nxt, wb_ref[2], preferred_element_type=f32)
            return out

        def batchnorm(h, g_ref, b_ref):
            # Training-mode BatchNorm2d: per-channel batch stats over (N,H,W),
            # biased variance, two-pass for stability, affine folded to one FMA.
            mean = jnp.dot(jnp.sum(h, axis=0, keepdims=True), pool,
                           preferred_element_type=f32) * inv_count        # (1, WC)
            d = h - mean
            var = jnp.dot(jnp.sum(d * d, axis=0, keepdims=True), pool,
                          preferred_element_type=f32) * inv_count         # (1, WC)
            scale = g_ref[...] * jax.lax.rsqrt(var + EPS)
            shift = b_ref[...] - mean * scale
            return h * scale + shift

        x = x_ref[...]                                           # (NH, WC) f32
        out = conv3x3(x, wb1_ref)                                # conv1
        out = jnp.maximum(batchnorm(out, g1_ref, b1_ref), 0.0)   # bn1 + relu
        out = conv3x3(out, wb2_ref)                              # conv2
        out = batchnorm(out, g2_ref, b2_ref)                     # bn2
        o_ref[...] = jnp.maximum(out + x, 0.0)                   # add identity + relu

    return kernel


def _banded_conv_weight(w_hwio, W):
    """(3, 3, Cin, Cout) HWIO conv weight -> (3, W*Cin, W*Cout) banded weight.

    band[ky][wi*Cin + ci, wo*Cout + co] = w[ky, wi - wo + 1, ci, co] when
    |wi - wo| <= 1, else 0, so that sum_ky x_row(h + ky - 1) @ band[ky] equals
    the 3x3 / pad=1 / stride=1 conv output row h in (w, c) lane-dense layout.
    """
    kh, kw, ci, co = w_hwio.shape
    wi = np.arange(W)[None, :, None]
    wo = np.arange(W)[None, None, :]
    kx = np.arange(kw)[:, None, None]
    sel = (wi - wo == kx - 1).astype(np.float32)                 # (kw, W, W)
    banded = jnp.einsum("kab,ykcd->yacbd", jnp.asarray(sel), w_hwio)
    return banded.reshape(kh, W * ci, W * co)


def basic_block(x, w1, g1, b1, w2, g2, b2):
    """x: (N, H, W, C) NHWC f32; w*: (3,3,C,C) HWIO; g*/b*: (C,). Needs W*C % 128 == 0."""
    N, H, W, C = x.shape
    NH, WC = N * H, W * C

    x2d = x.reshape(NH, WC)                      # free reshape: lane-dense (w, c) last
    wb1 = _banded_conv_weight(w1, W)
    wb2 = _banded_conv_weight(w2, W)
    # gamma/beta tiled over the w lanes -> (1, W*C): value gamma[c] at lane w*C + c
    g1t = jnp.tile(g1.reshape(-1), W).reshape(1, WC)
    b1t = jnp.tile(b1.reshape(-1), W).reshape(1, WC)
    g2t = jnp.tile(g2.reshape(-1), W).reshape(1, WC)
    b2t = jnp.tile(b2.reshape(-1), W).reshape(1, WC)

    out2d = pl.pallas_call(
        _make_kernel(N, H, W, C),
        out_shape=jax.ShapeDtypeStruct((NH, WC), jnp.float32),
        in_specs=[pl.BlockSpec(memory_space=pltpu.MemorySpace.VMEM)] * 7,
        out_specs=pl.BlockSpec(memory_space=pltpu.MemorySpace.VMEM),
    )(x2d, wb1, g1t, b1t, wb2, g2t, b2t)
    return out2d.reshape(N, H, W, C)


def reference(x, w1, g1, b1, w2, g2, b2):
    # pure-JAX reference for correctness checking
    def conv(h, w):
        return jax.lax.conv_general_dilated(
            h, w, window_strides=(1, 1), padding=((1, 1), (1, 1)),
            dimension_numbers=("NHWC", "HWIO", "NHWC"))

    def bn(h, g, b):
        mean = h.mean(axis=(0, 1, 2))
        var = ((h - mean) ** 2).mean(axis=(0, 1, 2))
        return (h - mean) / jnp.sqrt(var + EPS) * g.reshape(-1) + b.reshape(-1)

    out = jnp.maximum(bn(conv(x, w1), g1, b1), 0.0)
    out = bn(conv(out, w2), g2, b2)
    return jnp.maximum(out + x, 0.0)


if __name__ == "__main__":
    # BasicBlock(inplanes=8, planes=8, stride=1, downsample=None)
    N, H, W, C = 2, 16, 16, 8            # W * C = 128 -> lane-dense layout

    key = jax.random.PRNGKey(0)
    kx, k1, k2, kg1, kb1, kg2, kb2 = jax.random.split(key, 7)

    x = jax.random.normal(kx, (N, H, W, C), dtype=jnp.float32)
    w1 = 0.1 * jax.random.normal(k1, (3, 3, C, C), dtype=jnp.float32)   # conv1 weight (HWIO)
    w2 = 0.1 * jax.random.normal(k2, (3, 3, C, C), dtype=jnp.float32)   # conv2 weight (HWIO)
    # BatchNorm affine params (PyTorch default is ones/zeros; perturb deterministically)
    g1 = 1.0 + 0.1 * jax.random.normal(kg1, (C,), dtype=jnp.float32)
    b1 = 0.1 * jax.random.normal(kb1, (C,), dtype=jnp.float32)
    g2 = 1.0 + 0.1 * jax.random.normal(kg2, (C,), dtype=jnp.float32)
    b2 = 0.1 * jax.random.normal(kb2, (C,), dtype=jnp.float32)

    out = basic_block(x, w1, g1, b1, w2, g2, b2)
    out = jax.block_until_ready(out)

    ref = jax.block_until_ready(reference(x, w1, g1, b1, w2, g2, b2))
    np.testing.assert_allclose(np.asarray(out), np.asarray(ref), rtol=1e-4, atol=1e-4)

    print("KERNEL_OK")
</pallas_src>

<mosaic_0001>
module attributes {stable_mosaic.version = 11 : i64} {
  func.func @kernel(%arg0: memref<32x128xf32, #tpu.memory_space<vmem>>, %arg1: memref<3x128x128xf32, #tpu.memory_space<vmem>>, %arg2: memref<1x128xf32, #tpu.memory_space<vmem>>, %arg3: memref<1x128xf32, #tpu.memory_space<vmem>>, %arg4: memref<3x128x128xf32, #tpu.memory_space<vmem>>, %arg5: memref<1x128xf32, #tpu.memory_space<vmem>>, %arg6: memref<1x128xf32, #tpu.memory_space<vmem>>, %arg7: memref<32x128xf32, #tpu.memory_space<vmem>>) attributes {dimension_semantics = [], scalar_prefetch = 0 : i64, scratch_operands = 0 : i64, tpu.core_type = #tpu.core_type<tc>} {
    %0 = tpu.iota {dimensions = array<i32: 0>} : vector<32x32xi32>
    %1 = tpu.iota {dimensions = array<i32: 1>} : vector<32x32xi32>
    %2 = arith.subi %0, %1 : vector<32x32xi32>
    %c1_i32 = arith.constant 1 : i32
    %3 = vector.broadcast %c1_i32 : i32 to vector<32x32xi32>
    %4 = arith.cmpi eq, %2, %3 : vector<32x32xi32>
    %c16_i32 = arith.constant 16 : i32
    %c0_i32 = arith.constant 0 : i32
    %5 = arith.cmpi eq, %c16_i32, %c0_i32 : i32
    %c1_i32_0 = arith.constant 1 : i32
    %6 = arith.select %5, %c1_i32_0, %c16_i32 : i32
    %7 = vector.broadcast %6 : i32 to vector<32x32xi32>
    %8 = arith.remsi %0, %7 : vector<32x32xi32>
    %c0_i32_1 = arith.constant 0 : i32
    %9 = vector.broadcast %c0_i32_1 : i32 to vector<32x32xi32>
    %10 = arith.cmpi ne, %8, %9 : vector<32x32xi32>
    %c0_i32_2 = arith.constant 0 : i32
    %11 = vector.broadcast %c0_i32_2 : i32 to vector<32x32xi32>
    %12 = arith.cmpi slt, %8, %11 : vector<32x32xi32>
    %c0_i32_3 = arith.constant 0 : i32
    %13 = arith.cmpi slt, %6, %c0_i32_3 : i32
    %14 = vector.broadcast %13 : i1 to vector<32x32xi1>
    %15 = vector.broadcast %14 : vector<32x32xi1> to vector<32x32xi1>
    %16 = arith.xori %12, %15 : vector<32x32xi1>
    %17 = arith.andi %16, %10 : vector<32x32xi1>
    %18 = vector.broadcast %6 : i32 to vector<32x32xi32>
    %19 = arith.addi %8, %18 : vector<32x32xi32>
    %20 = arith.select %17, %19, %8 : vector<32x32xi1>, vector<32x32xi32>
    %c0_i32_4 = arith.constant 0 : i32
    %21 = vector.broadcast %c0_i32_4 : i32 to vector<32x32xi32>
    %22 = arith.cmpi ne, %20, %21 : vector<32x32xi32>
    %23 = arith.andi %4, %22 : vector<32x32xi1>
    %cst = arith.constant 1.000000e+00 : f32
    %cst_5 = arith.constant 0.000000e+00 : f32
    %24 = vector.broadcast %cst : f32 to vector<32x32xf32>
    %25 = vector.broadcast %cst_5 : f32 to vector<32x32xf32>
    %26 = arith.select %23, %24, %25 : vector<32x32xi1>, vector<32x32xf32>
    %27 = arith.subi %1, %0 : vector<32x32xi32>
    %c1_i32_6 = arith.constant 1 : i32
    %28 = vector.broadcast %c1_i32_6 : i32 to vector<32x32xi32>
    %29 = arith.cmpi eq, %27, %28 : vector<32x32xi32>
    %c16_i32_7 = arith.constant 16 : i32
    %c0_i32_8 = arith.constant 0 : i32
    %30 = arith.cmpi eq, %c16_i32_7, %c0_i32_8 : i32
    %c1_i32_9 = arith.constant 1 : i32
    %31 = arith.select %30, %c1_i32_9, %c16_i32_7 : i32
    %32 = vector.broadcast %31 : i32 to vector<32x32xi32>
    %33 = arith.remsi %0, %32 : vector<32x32xi32>
    %c0_i32_10 = arith.constant 0 : i32
    %34 = vector.broadcast %c0_i32_10 : i32 to vector<32x32xi32>
    %35 = arith.cmpi ne, %33, %34 : vector<32x32xi32>
    %c0_i32_11 = arith.constant 0 : i32
    %36 = vector.broadcast %c0_i32_11 : i32 to vector<32x32xi32>
    %37 = arith.cmpi slt, %33, %36 : vector<32x32xi32>
    %c0_i32_12 = arith.constant 0 : i32
    %38 = arith.cmpi slt, %31, %c0_i32_12 : i32
    %39 = vector.broadcast %38 : i1 to vector<32x32xi1>
    %40 = vector.broadcast %39 : vector<32x32xi1> to vector<32x32xi1>
    %41 = arith.xori %37, %40 : vector<32x32xi1>
    %42 = arith.andi %41, %35 : vector<32x32xi1>
    %43 = vector.broadcast %31 : i32 to vector<32x32xi32>
    %44 = arith.addi %33, %43 : vector<32x32xi32>
    %45 = arith.select %42, %44, %33 : vector<32x32xi1>, vector<32x32xi32>
    %c15_i32 = arith.constant 15 : i32
    %46 = vector.broadcast %c15_i32 : i32 to vector<32x32xi32>
    %47 = arith.cmpi ne, %45, %46 : vector<32x32xi32>
    %48 = arith.andi %29, %47 : vector<32x32xi1>
    %cst_13 = arith.constant 1.000000e+00 : f32
    %cst_14 = arith.constant 0.000000e+00 : f32
    %49 = vector.broadcast %cst_13 : f32 to vector<32x32xf32>
    %50 = vector.broadcast %cst_14 : f32 to vector<32x32xf32>
    %51 = arith.select %48, %49, %50 : vector<32x32xi1>, vector<32x32xf32>
    %52 = tpu.iota {dimensions = array<i32: 0>} : vector<128x128xi32>
    %53 = tpu.iota {dimensions = array<i32: 1>} : vector<128x128xi32>
    %c8_i32 = arith.constant 8 : i32
    %c0_i32_15 = arith.constant 0 : i32
    %54 = arith.cmpi eq, %c8_i32, %c0_i32_15 : i32
    %c1_i32_16 = arith.constant 1 : i32
    %55 = arith.select %54, %c1_i32_16, %c8_i32 : i32
    %56 = vector.broadcast %55 : i32 to vector<128x128xi32>
    %57 = arith.remsi %52, %56 : vector<128x128xi32>
    %c0_i32_17 = arith.constant 0 : i32
    %58 = vector.broadcast %c0_i32_17 : i32 to vector<128x128xi32>
    %59 = arith.cmpi ne, %57, %58 : vector<128x128xi32>
    %c0_i32_18 = arith.constant 0 : i32
    %60 = vector.broadcast %c0_i32_18 : i32 to vector<128x128xi32>
    %61 = arith.cmpi slt, %57, %60 : vector<128x128xi32>
    %c0_i32_19 = arith.constant 0 : i32
    %62 = arith.cmpi slt, %55, %c0_i32_19 : i32
    %63 = vector.broadcast %62 : i1 to vector<128x128xi1>
    %64 = vector.broadcast %63 : vector<128x128xi1> to vector<128x128xi1>
    %65 = arith.xori %61, %64 : vector<128x128xi1>
    %66 = arith.andi %65, %59 : vector<128x128xi1>
    %67 = vector.broadcast %55 : i32 to vector<128x128xi32>
    %68 = arith.addi %57, %67 : vector<128x128xi32>
    %69 = arith.select %66, %68, %57 : vector<128x128xi1>, vector<128x128xi32>
    %c8_i32_20 = arith.constant 8 : i32
    %c0_i32_21 = arith.constant 0 : i32
    %70 = arith.cmpi eq, %c8_i32_20, %c0_i32_21 : i32
    %c1_i32_22 = arith.constant 1 : i32
    %71 = arith.select %70, %c1_i32_22, %c8_i32_20 : i32
    %72 = vector.broadcast %71 : i32 to vector<128x128xi32>
    %73 = arith.remsi %53, %72 : vector<128x128xi32>
    %c0_i32_23 = arith.constant 0 : i32
    %74 = vector.broadcast %c0_i32_23 : i32 to vector<128x128xi32>
    %75 = arith.cmpi ne, %73, %74 : vector<128x128xi32>
    %c0_i32_24 = arith.constant 0 : i32
    %76 = vector.broadcast %c0_i32_24 : i32 to vector<128x128xi32>
    %77 = arith.cmpi slt, %73, %76 : vector<128x128xi32>
    %c0_i32_25 = arith.constant 0 : i32
    %78 = arith.cmpi slt, %71, %c0_i32_25 : i32
    %79 = vector.broadcast %78 : i1 to vector<128x128xi1>
    %80 = vector.broadcast %79 : vector<128x128xi1> to vector<128x128xi1>
    %81 = arith.xori %77, %80 : vector<128x128xi1>
    %82 = arith.andi %81, %75 : vector<128x128xi1>
    %83 = vector.broadcast %71 : i32 to vector<128x128xi32>
    %84 = arith.addi %73, %83 : vector<128x128xi32>
    %85 = arith.select %82, %84, %73 : vector<128x128xi1>, vector<128x128xi32>
    %86 = arith.cmpi eq, %69, %85 : vector<128x128xi32>
    %cst_26 = arith.constant 1.000000e+00 : f32
    %cst_27 = arith.constant 0.000000e+00 : f32
    %87 = vector.broadcast %cst_26 : f32 to vector<128x128xf32>
    %88 = vector.broadcast %cst_27 : f32 to vector<128x128xf32>
    %89 = arith.select %86, %87, %88 : vector<128x128xi1>, vector<128x128xf32>
    %c0 = arith.constant 0 : index
    %c0_28 = arith.constant 0 : index
    %90 = vector.load %arg0[%c0, %c0_28] : memref<32x128xf32, #tpu.memory_space<vmem>>, vector<32x128xf32>
    %cst_29 = arith.constant dense<0.000000e+00> : vector<32x128xf32>
    %91 = tpu.matmul %26, %90, %cst_29 {dimension_numbers = #tpu.dot_dimension_numbers<[1], [0], [0], [1], [0, 0, 1, 1], [], []>} : vector<32x32xf32>, vector<32x128xf32>, vector<32x128xf32> -> vector<32x128xf32>
    %cst_30 = arith.constant dense<0.000000e+00> : vector<32x128xf32>
    %92 = tpu.matmul %51, %90, %cst_30 {dimension_numbers = #tpu.dot_dimension_numbers<[1], [0], [0], [1], [0, 0, 1, 1], [], []>} : vector<32x32xf32>, vector<32x128xf32>, vector<32x128xf32> -> vector<32x128xf32>
    %c0_31 = arith.constant 0 : index
    %c0_32 = arith.constant 0 : index
    %c0_33 = arith.constant 0 : index
    %93 = vector.load %arg1[%c0_31, %c0_32, %c0_33] : memref<3x128x128xf32, #tpu.memory_space<vmem>>, vector<1x128x128xf32>
    %94 = vector.shape_cast %93 : vector<1x128x128xf32> to vector<128x128xf32>
    %cst_34 = arith.constant dense<0.000000e+00> : vector<32x128xf32>
    %95 = tpu.matmul %91, %94, %cst_34 {dimension_numbers = #tpu.dot_dimension_numbers<[1], [0], [0], [1], [0, 0, 1, 1], [], []>} : vector<32x128xf32>, vector<128x128xf32>, vector<32x128xf32> -> vector<32x128xf32>
    %c1 = arith.constant 1 : index
    %c0_35 = arith.constant 0 : index
    %c0_36 = arith.constant 0 : index
    %96 = vector.load %arg1[%c1, %c0_35, %c0_36] : memref<3x128x128xf32, #tpu.memory_space<vmem>>, vector<1x128x128xf32>
    %97 = vector.shape_cast %96 : vector<1x128x128xf32> to vector<128x128xf32>
    %cst_37 = arith.constant dense<0.000000e+00> : vector<32x128xf32>
    %98 = tpu.matmul %90, %97, %cst_37 {dimension_numbers = #tpu.dot_dimension_numbers<[1], [0], [0], [1], [0, 0, 1, 1], [], []>} : vector<32x128xf32>, vector<128x128xf32>, vector<32x128xf32> -> vector<32x128xf32>
    %99 = arith.addf %95, %98 : vector<32x128xf32>
    %c2 = arith.constant 2 : index
    %c0_38 = arith.constant 0 : index
    %c0_39 = arith.constant 0 : index
    %100 = vector.load %arg1[%c2, %c0_38, %c0_39] : memref<3x128x128xf32, #tpu.memory_space<vmem>>, vector<1x128x128xf32>
    %101 = vector.shape_cast %100 : vector<1x128x128xf32> to vector<128x128xf32>
    %cst_40 = arith.constant dense<0.000000e+00> : vector<32x128xf32>
    %102 = tpu.matmul %92, %101, %cst_40 {dimension_numbers = #tpu.dot_dimension_numbers<[1], [0], [0], [1], [0, 0, 1, 1], [], []>} : vector<32x128xf32>, vector<128x128xf32>, vector<32x128xf32> -> vector<32x128xf32>
    %103 = arith.addf %99, %102 : vector<32x128xf32>
    %cst_41 = arith.constant dense<0.000000e+00> : vector<128xf32>
    %104 = vector.multi_reduction <add>, %103, %cst_41 [0] : vector<32x128xf32> to vector<128xf32>
    %105 = vector.shape_cast %104 : vector<128xf32> to vector<1x128xf32>
    %cst_42 = arith.constant dense<0.000000e+00> : vector<1x128xf32>
    %106 = tpu.matmul %105, %89, %cst_42 {dimension_numbers = #tpu.dot_dimension_numbers<[1], [0], [0], [1], [0, 0, 1, 1], [], []>} : vector<1x128xf32>, vector<128x128xf32>, vector<1x128xf32> -> vector<1x128xf32>
    %cst_43 = arith.constant 0.001953125 : f32
    %107 = vector.broadcast %cst_43 : f32 to vector<1x128xf32>
    %108 = arith.mulf %106, %107 : vector<1x128xf32>
    %109 = vector.broadcast %108 : vector<1x128xf32> to vector<32x128xf32>
    %110 = arith.subf %103, %109 : vector<32x128xf32>
    %111 = arith.mulf %110, %110 : vector<32x128xf32>
    %cst_44 = arith.constant dense<0.000000e+00> : vector<128xf32>
    %112 = vector.multi_reduction <add>, %111, %cst_44 [0] : vector<32x128xf32> to vector<128xf32>
    %113 = vector.shape_cast %112 : vector<128xf32> to vector<1x128xf32>
    %cst_45 = arith.constant dense<0.000000e+00> : vector<1x128xf32>
    %114 = tpu.matmul %113, %89, %cst_45 {dimension_numbers = #tpu.dot_dimension_numbers<[1], [0], [0], [1], [0, 0, 1, 1], [], []>} : vector<1x128xf32>, vector<128x128xf32>, vector<1x128xf32> -> vector<1x128xf32>
    %cst_46 = arith.constant 0.001953125 : f32
    %115 = vector.broadcast %cst_46 : f32 to vector<1x128xf32>
    %116 = arith.mulf %114, %115 : vector<1x128xf32>
    %c0_47 = arith.constant 0 : index
    %c0_48 = arith.constant 0 : index
    %117 = vector.load %arg2[%c0_47, %c0_48] : memref<1x128xf32, #tpu.memory_space<vmem>>, vector<1x128xf32>
    %cst_49 = arith.constant 9.99999974E-6 : f32
    %118 = vector.broadcast %cst_49 : f32 to vector<1x128xf32>
    %119 = arith.addf %116, %118 : vector<1x128xf32>
    %120 = math.rsqrt %119 : vector<1x128xf32>
    %121 = arith.mulf %117, %120 : vector<1x128xf32>
    %c0_50 = arith.constant 0 : index
    %c0_51 = arith.constant 0 : index
    %122 = vector.load %arg3[%c0_50, %c0_51] : memref<1x128xf32, #tpu.memory_space<vmem>>, vector<1x128xf32>
    %123 = arith.mulf %108, %121 : vector<1x128xf32>
    %124 = arith.subf %122, %123 : vector<1x128xf32>
    %125 = vector.broadcast %121 : vector<1x128xf32> to vector<32x128xf32>
    %126 = arith.mulf %103, %125 : vector<32x128xf32>
    %127 = vector.broadcast %124 : vector<1x128xf32> to vector<32x128xf32>
    %128 = arith.addf %126, %127 : vector<32x128xf32>
    %cst_52 = arith.constant 0.000000e+00 : f32
    %129 = vector.broadcast %cst_52 : f32 to vector<32x128xf32>
    %130 = arith.maximumf %128, %129 : vector<32x128xf32>
    %cst_53 = arith.constant dense<0.000000e+00> : vector<32x128xf32>
    %131 = tpu.matmul %26, %130, %cst_53 {dimension_numbers = #tpu.dot_dimension_numbers<[1], [0], [0], [1], [0, 0, 1, 1], [], []>} : vector<32x32xf32>, vector<32x128xf32>, vector<32x128xf32> -> vector<32x128xf32>
    %cst_54 = arith.constant dense<0.000000e+00> : vector<32x128xf32>
    %132 = tpu.matmul %51, %130, %cst_54 {dimension_numbers = #tpu.dot_dimension_numbers<[1], [0], [0], [1], [0, 0, 1, 1], [], []>} : vector<32x32xf32>, vector<32x128xf32>, vector<32x128xf32> -> vector<32x128xf32>
    %c0_55 = arith.constant 0 : index
    %c0_56 = arith.constant 0 : index
    %c0_57 = arith.constant 0 : index
    %133 = vector.load %arg4[%c0_55, %c0_56, %c0_57] : memref<3x128x128xf32, #tpu.memory_space<vmem>>, vector<1x128x128xf32>
    %134 = vector.shape_cast %133 : vector<1x128x128xf32> to vector<128x128xf32>
    %cst_58 = arith.constant dense<0.000000e+00> : vector<32x128xf32>
    %135 = tpu.matmul %131, %134, %cst_58 {dimension_numbers = #tpu.dot_dimension_numbers<[1], [0], [0], [1], [0, 0, 1, 1], [], []>} : vector<32x128xf32>, vector<128x128xf32>, vector<32x128xf32> -> vector<32x128xf32>
    %c1_59 = arith.constant 1 : index
    %c0_60 = arith.constant 0 : index
    %c0_61 = arith.constant 0 : index
    %136 = vector.load %arg4[%c1_59, %c0_60, %c0_61] : memref<3x128x128xf32, #tpu.memory_space<vmem>>, vector<1x128x128xf32>
    %137 = vector.shape_cast %136 : vector<1x128x128xf32> to vector<128x128xf32>
    %cst_62 = arith.constant dense<0.000000e+00> : vector<32x128xf32>
    %138 = tpu.matmul %130, %137, %cst_62 {dimension_numbers = #tpu.dot_dimension_numbers<[1], [0], [0], [1], [0, 0, 1, 1], [], []>} : vector<32x128xf32>, vector<128x128xf32>, vector<32x128xf32> -> vector<32x128xf32>
    %139 = arith.addf %135, %138 : vector<32x128xf32>
    %c2_63 = arith.constant 2 : index
    %c0_64 = arith.constant 0 : index
    %c0_65 = arith.constant 0 : index
    %140 = vector.load %arg4[%c2_63, %c0_64, %c0_65] : memref<3x128x128xf32, #tpu.memory_space<vmem>>, vector<1x128x128xf32>
    %141 = vector.shape_cast %140 : vector<1x128x128xf32> to vector<128x128xf32>
    %cst_66 = arith.constant dense<0.000000e+00> : vector<32x128xf32>
    %142 = tpu.matmul %132, %141, %cst_66 {dimension_numbers = #tpu.dot_dimension_numbers<[1], [0], [0], [1], [0, 0, 1, 1], [], []>} : vector<32x128xf32>, vector<128x128xf32>, vector<32x128xf32> -> vector<32x128xf32>
    %143 = arith.addf %139, %142 : vector<32x128xf32>
    %cst_67 = arith.constant dense<0.000000e+00> : vector<128xf32>
    %144 = vector.multi_reduction <add>, %143, %cst_67 [0] : vector<32x128xf32> to vector<128xf32>
    %145 = vector.shape_cast %144 : vector<128xf32> to vector<1x128xf32>
    %cst_68 = arith.constant dense<0.000000e+00> : vector<1x128xf32>
    %146 = tpu.matmul %145, %89, %cst_68 {dimension_numbers = #tpu.dot_dimension_numbers<[1], [0], [0], [1], [0, 0, 1, 1], [], []>} : vector<1x128xf32>, vector<128x128xf32>, vector<1x128xf32> -> vector<1x128xf32>
    %cst_69 = arith.constant 0.001953125 : f32
    %147 = vector.broadcast %cst_69 : f32 to vector<1x128xf32>
    %148 = arith.mulf %146, %147 : vector<1x128xf32>
    %149 = vector.broadcast %148 : vector<1x128xf32> to vector<32x128xf32>
    %150 = arith.subf %143, %149 : vector<32x128xf32>
    %151 = arith.mulf %150, %150 : vector<32x128xf32>
    %cst_70 = arith.constant dense<0.000000e+00> : vector<128xf32>
    %152 = vector.multi_reduction <add>, %151, %cst_70 [0] : vector<32x128xf32> to vector<128xf32>
    %153 = vector.shape_cast %152 : vector<128xf32> to vector<1x128xf32>
    %cst_71 = arith.constant dense<0.000000e+00> : vector<1x128xf32>
    %154 = tpu.matmul %153, %89, %cst_71 {dimension_numbers = #tpu.dot_dimension_numbers<[1], [0], [0], [1], [0, 0, 1, 1], [], []>} : vector<1x128xf32>, vector<128x128xf32>, vector<1x128xf32> -> vector<1x128xf32>
    %cst_72 = arith.constant 0.001953125 : f32
    %155 = vector.broadcast %cst_72 : f32 to vector<1x128xf32>
    %156 = arith.mulf %154, %155 : vector<1x128xf32>
    %c0_73 = arith.constant 0 : index
    %c0_74 = arith.constant 0 : index
    %157 = vector.load %arg5[%c0_73, %c0_74] : memref<1x128xf32, #tpu.memory_space<vmem>>, vector<1x128xf32>
    %cst_75 = arith.constant 9.99999974E-6 : f32
    %158 = vector.broadcast %cst_75 : f32 to vector<1x128xf32>
    %159 = arith.addf %156, %158 : vector<1x128xf32>
    %160 = math.rsqrt %159 : vector<1x128xf32>
    %161 = arith.mulf %157, %160 : vector<1x128xf32>
    %c0_76 = arith.constant 0 : index
    %c0_77 = arith.constant 0 : index
    %162 = vector.load %arg6[%c0_76, %c0_77] : memref<1x128xf32, #tpu.memory_space<vmem>>, vector<1x128xf32>
    %163 = arith.mulf %148, %161 : vector<1x128xf32>
    %164 = arith.subf %162, %163 : vector<1x128xf32>
    %165 = vector.broadcast %161 : vector<1x128xf32> to vector<32x128xf32>
    %166 = arith.mulf %143, %165 : vector<32x128xf32>
    %167 = vector.broadcast %164 : vector<1x128xf32> to vector<32x128xf32>
    %168 = arith.addf %166, %167 : vector<32x128xf32>
    %169 = arith.addf %168, %90 : vector<32x128xf32>
    %cst_78 = arith.constant 0.000000e+00 : f32
    %170 = vector.broadcast %cst_78 : f32 to vector<32x128xf32>
    %171 = arith.maximumf %169, %170 : vector<32x128xf32>
    %c0_79 = arith.constant 0 : index
    %c0_80 = arith.constant 0 : index
    %172 = vector.load %arg7[%c0_79, %c0_80] : memref<32x128xf32, #tpu.memory_space<vmem>>, vector<32x128xf32>
    tpu.vector_store %arg7[%c0_79, %c0_80], %171 {strides = array<i32>} : memref<32x128xf32, #tpu.memory_space<vmem>>, vector<32x128xf32>,
    return
  }
}

</mosaic_0001>

<bundles_post_ra>
// kernel: tpu_custom_call.1
= control target key start
LH: loop header
LB: loop body
LE: loop exit
PB: predicated region body
PF: predicated region fallthrough
CT: control target
= control target key end

     0   :  { %12 = vsyncpa [#allocation3], 0  ;;  %s3534_s0 = inlined_call_operand.hbm [shape: f32[32,128], index: 0, kind: input, shape index: {}]   ;;  %s3535_s1 = inlined_call_operand.hbm [shape: f32[3,128,128], index: 1, kind: input, shape index: {}]   ;;  %s3536_s2 = inlined_call_operand.vmem [shape: f32[1,128], index: 2, kind: input, shape index: {}]   ;;  %s3537_s3 = inlined_call_operand.vmem [shape: f32[1,128], index: 3, kind: input, shape index: {}]   ;;  %s3538_s4 = inlined_call_operand.hbm [shape: f32[3,128,128], index: 4, kind: input, shape index: {}]   ;;  %s3539_s5 = inlined_call_operand.vmem [shape: f32[1,128], index: 5, kind: input, shape index: {}]   ;;  %s3540_s6 = inlined_call_operand.vmem [shape: f32[1,128], index: 6, kind: input, shape index: {}]   ;;  %s3541_s7 = inlined_call_operand.hbm [shape: f32[32,128], index: 7, kind: output, shape index: {}]  }
   0x1   :  { %13 = vsyncpa [#allocation6], 0 }
   0x2   :  { %14 = vsyncpa [#allocation4], 0  ;;  %s3002_s24 = smov [#allocation5]   ;;  %s3003_s26 = smov [#allocation2]  }
   0x3   :  { %s32_s25 = sshll.u32 %s3002_s24, 4  ;;  %s20_s27 = sshll.u32 %s3003_s26, 4  ;;  %s33_s25 = int_to_ptr.vmem [resolvable:$true] %s32_s25  ;;  %s3052_s27 = int_to_ptr.vmem [resolvable:$true] %s20_s27 }
   0x4   :  { %s2908_s30 = scalar_lea.hbm %s3535_s1, 6144 }
   0x5   :  { %p2909_p0 = scmp.ne.s32.totalorder %s3535_s1, %s2908_s30  ;;  %p2912_p1 = scmp.lt.u32.totalorder %s2908_s30, %s3535_s1 }
   0x7   :  { %p2914_p2 = pnand %p2912_p1, %p2909_p0 }
   0x9   :  { %2917 = shalt.err (!%p2914_p2)
}
   0xa   :  { %s2918_s12 = scalar_lea.vmem %s33_s25, 6144  ;;  %p2923_p4 = scmp.lt.s32.totalorder %s33_s25, %s33_s25 }
   0xb   :  { %p2919_p3 = scmp.ne.s32.totalorder %s33_s25, %s2918_s12  ;;  %p2924_p5 = scmp.lt.s32.totalorder %s2918_s12, %s2918_s12 }
   0xd   :  { %p2925_p6 = por %p2924_p5, %p2923_p4 }
   0xf   :  { %p2926_p7 = pnand %p2925_p6, %p2919_p3 }
  0x11   :  { %2929 = shalt.err (!%p2926_p7)
}
  0x12   :  { %s3004_s13 = smov 128   ;;  %s3005_s14 = smov 8  }
  0x13   :  { %38 = dma.hbm_to_vmem [thread:$0]  %s3535_s1, 6144, %s33_s25, [#allocation6], %s3004_s13, %s3004_s13, %s3005_s14  }
  0x14   :  { %s2930_s19 = scalar_lea.hbm %s3534_s0, 512 }
  0x15   :  { %p2931_p8 = scmp.ne.s32.totalorder %s3534_s0, %s2930_s19  ;;  %p2934_p9 = scmp.lt.u32.totalorder %s2930_s19, %s3534_s0 }
  0x17   :  { %p2936_p10 = pnand %p2934_p9, %p2931_p8 }
  0x19   :  { %2939 = shalt.err (!%p2936_p10)
}
  0x1a   :  { %s2940_s24 = scalar_lea.vmem %s3052_s27, 512  ;;  %p2945_p12 = scmp.lt.s32.totalorder %s3052_s27, %s3052_s27 }
  0x1b   :  { %p2941_p11 = scmp.ne.s32.totalorder %s3052_s27, %s2940_s24  ;;  %p2946_p13 = scmp.lt.s32.totalorder %s2940_s24, %s2940_s24 }
  0x1d   :  { %p2947_p0 = por %p2946_p13, %p2945_p12 }
  0x1f   :  { %p2948_p1 = pnand %p2947_p0, %p2941_p11 }
  0x21   :  { %2951 = shalt.err (!%p2948_p1)
}
  0x22   :  { %26 = dma.hbm_to_vmem [thread:$0]  %s3534_s0, 512, %s3052_s27, [#allocation3], %s3004_s13, %s3004_s13, %s3005_s14  }
  0x23   :  { %s3006_s26 = smov [#allocation7]   ;;  %s2952_s8 = scalar_lea.hbm %s3538_s4, 6144 }
  0x24   :  { %s48_s28 = sshll.u32 %s3006_s26, 4  ;;  %p2953_p2 = scmp.ne.s32.totalorder %s3538_s4, %s2952_s8  ;;  %s49_s28 = int_to_ptr.vmem [resolvable:$true] %s48_s28 }
  0x25   :  { %p2956_p3 = scmp.lt.u32.totalorder %s2952_s8, %s3538_s4 }
  0x27   :  { %p2958_p4 = pnand %p2956_p3, %p2953_p2 }
  0x29   :  { %2961 = shalt.err (!%p2958_p4)
}
  0x2a   :  { %s2962_s15 = scalar_lea.vmem %s49_s28, 6144  ;;  %p2967_p6 = scmp.lt.s32.totalorder %s49_s28, %s49_s28 }
  0x2b   :  { %p2963_p5 = scmp.ne.s32.totalorder %s49_s28, %s2962_s15  ;;  %p2968_p7 = scmp.lt.s32.totalorder %s2962_s15, %s2962_s15 }
  0x2d   :  { %p2969_p8 = por %p2968_p7, %p2967_p6 }
  0x2f   :  { %p2970_p9 = pnand %p2969_p8, %p2963_p5 }
  0x31   :  { %2973 = shalt.err (!%p2970_p9)
}
  0x32   :  { %54 = dma.hbm_to_vmem [thread:$0]  %s3538_s4, 6144, %s49_s28, [#allocation6], %s3004_s13, %s3004_s13, %s3005_s14  }
  0x33   :  { %2996 = dma.done.wait [#allocation3], 512  }
  0x34   :  { %2997 = vsyncadd [#allocation3], 4294966784 }
  0x35   :  { %2998 = dma.done.wait [#allocation6], 12288  }
  0x36   :  { %2999 = vsyncadd [#allocation6], 4294955008  ;;  %v68_v0 = vlaneseq  ;;  %v3121_v8 = vld [vmem:[#allocation2] sm:$0xff]  ;;  %v3123_v9 = vld [vmem:[#allocation2 + $0x8] sm:$0xff]  ;;  %vm415_vm2 = vcmask 261120   ;;  %v3007_v18 = vmov 0.0  }
  0x37   :  { %v3125_v10 = vld [vmem:[#allocation2 + $0x10] sm:$0xff]  ;;  %v2554_v13 = vpack.c.bf16 %v3123_v9, %v3121_v8  ;;  %v3132_v14 = vld [vmem:[#allocation2 + $0x18] sm:$0xff]  ;;  %v627_v31 = vld [vmem:[#allocation5 + $0x80] sm:$0xff] }
  0x38   :  { %v3104_v1 = vshrl.u32 %v68_v0, 7  ;;  %v3106_v2 = vand.u32 127, %v68_v0  ;;  %v2558_v17 = vpack.c.bf16 %v3132_v14, %v3125_v10  ;;  %v628_v32 = vld [vmem:[#allocation5 + $0x88] sm:$0xff]  ;;  %v629_v38 = vld [vmem:[#allocation5 + $0x90] sm:$0xff]  ;;  %v630_v39 = vld [vmem:[#allocation5 + $0x98] sm:$0xff] }
  0x39   :  { %2555 = vmatprep.subr.bf16.mxu0 %v2554_v13  ;;  %v2570_v35 = vpack.c.bf16 %v628_v32, %v627_v31  ;;  %v2574_v42 = vpack.c.bf16 %v630_v39, %v629_v38  ;;  %v631_v43 = vld [vmem:[#allocation5 + $0xa0] sm:$0xff]  ;;  %v632_v44 = vld [vmem:[#allocation5 + $0xa8] sm:$0xff]  ;;  %v633_v47 = vld [vmem:[#allocation5 + $0xb0] sm:$0xff]  ;;  %v3008_v39 = vmov 0.0|0.0  }
  0x3a   :  { %v75_v3 = vsub.s32 %v3104_v1, %v3106_v2  ;;  %v87_v4 = vand.u32 15, %v3104_v1  ;;  %v3112_v5 = vadd.s32 8, %v3104_v1  ;;  %v3115_v6 = vadd.s32 16, %v3104_v1  ;;  %2557 = vmatpush3.bf16.msra.mxu0 %v2554_v13  ;;  %v634_v48 = vld [vmem:[#allocation5 + $0xb8] sm:$0xff]  ;;  %v635_v50 = vld [vmem:[#allocation5 + $0xc0] sm:$0xff]  ;;  %v636_v51 = vld [vmem:[#allocation5 + $0xc8] sm:$0xff]  ;;  %2666 = vmatprep.subr.bf16.mxu1 %v3008_v39 }
  0x3b   :  { %v3139_v16 = vadd.s32 24, %v3104_v1  ;;  %2559 = vmatprep.subr.bf16.mxu0 %v2558_v17  ;;  %v143_v21 = vsub.s32 %v3106_v2, %v3104_v1  ;;  %v2578_v46 = vpack.c.bf16 %v632_v44, %v631_v43  ;;  %v2582_v49 = vpack.c.bf16 %v634_v48, %v633_v47  ;;  %v637_v53 = vld [vmem:[#allocation5 + $0xd0] sm:$0xff]  ;;  %v638_v54 = vld [vmem:[#allocation5 + $0xd8] sm:$0xff]  ;;  %v639_v56 = vld [vmem:[#allocation5 + $0xe0] sm:$0xff] }
  0x3c   :  { %vm3117_vm0 = vcmp.eq.s32.totalorder %v75_v3, 1  ;;  %vm131_vm1 = vcmp.ne.s32.totalorder %v87_v4, 0  ;;  %v77_v11 = vsub.s32 %v3115_v6, %v3106_v2  ;;  %v101_v12 = vand.u32 15, %v3115_v6  ;;  %v640_v57 = vld [vmem:[#allocation5 + $0xe8] sm:$0xff]  ;;  %v641_v59 = vld [vmem:[#allocation5 + $0xf0] sm:$0xff]  ;;  %v642_v60 = vld [vmem:[#allocation5 + $0xf8] sm:$0xff] }
  0x3d   :  { %vm135_vm3 = vmand %vm3117_vm0, %vm131_vm1  ;;  %v76_v15 = vsub.s32 %v3112_v5, %v3106_v2  ;;  %v78_v20 = vsub.s32 %v3139_v16, %v3106_v2  ;;  %v144_v22 = vsub.s32 %v3106_v2, %v3112_v5  ;;  %v94_v23 = vand.u32 15, %v3112_v5  ;;  %v610_v62 = vld [vmem:[#allocation5] sm:$0xff]  ;;  %v611_v63 = vld [vmem:[#allocation5 + $0x8] sm:$0xff] }
  0x3e   :  { %v3144_v19 = vsel %vm135_vm3, 1.0, %v3007_v18  ;;  %vm81_vm4 = vcmp.eq.s32.totalorder %v77_v11, 1  ;;  %vm133_vm5 = vcmp.ne.s32.totalorder %v101_v12, 0  ;;  %2561 = vmatpush3.bf16.msra.mxu0 %v2558_v17  ;;  %vm147_vm9 = vcmp.eq.s32.totalorder %v143_v21, 1  ;;  %v612_v3 = vld [vmem:[#allocation5 + $0x10] sm:$0xff]  ;;  %v613_v4 = vld [vmem:[#allocation5 + $0x18] sm:$0xff] }
  0x3f   :  { %2138 = vmatprep.mubr.msk.f32.mxu0 %vm415_vm2, %v3144_v19  ;;  %vm80_vm6 = vcmp.eq.s32.totalorder %v76_v15, 1  ;;  %vm137_vm7 = vmand %vm81_vm4, %vm133_vm5  ;;  %2563 = vmatprep.subr.bf16.mxu0 %v2554_v13  ;;  %vm82_vm8 = vcmp.eq.s32.totalorder %v78_v20, 1  ;;  %vm3161_vm10 = vcmp.eq.s32.totalorder %v144_v22, 1  ;;  %vm3165_vm11 = vcmp.ne.s32.totalorder %v94_v23, 15  ;;  %v615_v11 = vld [vmem:[#allocation5 + $0x28] sm:$0xff]  ;;  %v617_v15 = vld [vmem:[#allocation5 + $0x38] sm:$0xff] }
  0x40   :  { %v3156_v24 = vsel %vm80_vm6, 1.0, %v3007_v18  ;;  %v3159_v25 = vsel %vm137_vm7, 1.0, %v3007_v18  ;;  %v145_v28 = vsub.s32 %v3106_v2, %v3115_v6  ;;  %v108_v29 = vand.u32 15, %v3139_v16  ;;  %vm156_vm12 = vmand %vm3161_vm10, %vm3165_vm11  ;;  %v618_v20 = vld [vmem:[#allocation5 + $0x40] sm:$0xff]  ;;  %v619_v21 = vld [vmem:[#allocation5 + $0x48] sm:$0xff] }
  0x41   :  { %v146_v30 = vsub.s32 %v3106_v2, %v3139_v16  ;;  %2139 = vmatmul.mubr.msk.f32.vlgmr.msra.gmra.mrb[0].mxu0 %vm415_vm2, %v3156_v24  ;;  %v3179_v33 = vsel %vm82_vm8, 1.0, %v3007_v18  ;;  %v3182_v34 = vsel %vm147_vm9, 1.0, %v3007_v18  ;;  %v3201_v40 = vsel %vm156_vm12, 1.0, %v3007_v18  ;;  %v620_v23 = vld [vmem:[#allocation5 + $0x50] sm:$0xff]  ;;  %v621_v26 = vld [vmem:[#allocation5 + $0x58] sm:$0xff]  ;;  %v623_v27 = vld [vmem:[#allocation5 + $0x68] sm:$0xff] }
  0x42   :  { %2565 = vmatpush3.bf16.msra.mxu0 %v2554_v13  ;;  %2141 = vmatprep.mubr.msk.f32.mxu0 %vm415_vm2, %v3159_v25  ;;  %vm149_vm13 = vcmp.eq.s32.totalorder %v145_v28, 1  ;;  %vm3192_vm15 = vcmp.ne.s32.totalorder %v108_v29, 15  ;;  %v2586_v52 = vpack.c.bf16 %v636_v51, %v635_v50  ;;  %v2590_v55 = vpack.c.bf16 %v638_v54, %v637_v53  ;;  %v616_v13 = vld [vmem:[#allocation5 + $0x30] sm:$0xff]  ;;  %v814_v31 = vld [vmem:[#allocation5 + $0x100] sm:$0xff]  ;;  %v815_v32 = vld [vmem:[#allocation5 + $0x108] sm:$0xff] }
  0x43   :  { %2567 = vmatprep.subr.bf16.mxu0 %v2558_v17  ;;  %vm3188_vm14 = vcmp.eq.s32.totalorder %v146_v30, 1  ;;  %v3204_v41 = vsel %vm149_vm13, 1.0, %v3007_v18  ;;  %v2594_v58 = vpack.c.bf16 %v640_v57, %v639_v56  ;;  %v2598_v61 = vpack.c.bf16 %v642_v60, %v641_v59  ;;  %v624_v29 = vld [vmem:[#allocation5 + $0x70] sm:$0xff]  ;;  %v817_v50 = vld [vmem:[#allocation5 + $0x118] sm:$0xff]  ;;  %v818_v54 = vld [vmem:[#allocation5 + $0x120] sm:$0xff] }
  0x44   :  { %vm158_vm0 = vmand %vm3188_vm14, %vm3192_vm15  ;;  %v2602_v0 = vpack.c.bf16 %v611_v63, %v610_v62  ;;  %v2606_v7 = vpack.c.bf16 %v613_v4, %v612_v3  ;;  %v2618_v22 = vpack.c.bf16 %v619_v21, %v618_v20  ;;  %v3224_v36 = vand.u32 7, %v3106_v2  ;;  %v820_v59 = vld [vmem:[#allocation5 + $0x130] sm:$0xff]  ;;  %v821_v60 = vld [vmem:[#allocation5 + $0x138] sm:$0xff] }
  0x45   :  { %2142 = vmatmul.mubr.msk.f32.gmra.mrb[2].mxu0 %vm415_vm2, %v3179_v33  ;;  %v3215_v45 = vsel %vm158_vm0, 1.0, %v3007_v18  ;;  %v179_v37 = vand.u32 7, %v3104_v1  ;;  %v186_v38 = vand.u32 7, %v3112_v5  ;;  %v200_v43 = vand.u32 7, %v3139_v16  ;;  %v823_v3 = vld [vmem:[#allocation5 + $0x148] sm:$0xff]  ;;  %v828_v21 = vld [vmem:[#allocation5 + $0x170] sm:$0xff] }
  0x46   :  { %2569 = vmatpush3.bf16.msra.mxu0 %v2558_v17  ;;  %2152 = vmatprep.mubr.msk.f32.mxu0 %vm415_vm2, %v3182_v34  ;;  %v2614_v17 = vpack.c.bf16 %v617_v15, %v616_v13  ;;  %v163_v44 = vadd.s32 32, %v3104_v1  ;;  %v3009_v47 = vmov 1.0|1.0   ;;  %v2646_v62 = vpack.c.bf16 %v821_v60, %v820_v59  ;;  %v826_v15 = vld [vmem:[#allocation5 + $0x160] sm:$0xff] }
  0x47   :  { %2571 = vmatprep.subr.bf16.mxu0 %v2570_v35  ;;  %vm379_vm1 = vcmp.eq.s32.totalorder %v179_v37, %v3224_v36  ;;  %vm380_vm3 = vcmp.eq.s32.totalorder %v186_v38, %v3224_v36  ;;  %vm382_vm6 = vcmp.eq.s32.totalorder %v200_v43, %v3224_v36  ;;  %v171_v43 = vadd.s32 96, %v3104_v1 }
  0x48   :  { %vm3235_vm4 = vmpackc.low %vm380_vm3, %vm379_vm1  ;;  %v207_v5 = vand.u32 7, %v163_v44  ;;  %v172_v44 = vadd.s32 104, %v3104_v1 }
  0x49   :  { %2153 = vmatmul.mubr.msk.f32.vlgmr.msra.gmra.mrb[4].mxu0 %vm415_vm2, %v3201_v40  ;;  %2668 = vmatpush3.bf16.msk.msra.mxu1 %vm3235_vm4, %v3009_v47 }
  0x4a   :  { %2155 = vmatprep.mubr.msk.f32.mxu0 %vm415_vm2, %v3204_v41  ;;  %2573 = vmatpush3.bf16.msra.mxu0 %v2570_v35  ;;  %v2634_v35 = vpack.c.bf16 %v815_v32, %v814_v31  ;;  %vm383_vm8 = vcmp.eq.s32.totalorder %v207_v5, %v3224_v36  ;;  %v169_v32 = vadd.s32 80, %v3104_v1  ;;  %v263_v5 = vand.u32 7, %v171_v43 }
  0x4b   :  { %2575 = vmatprep.subr.bf16.mxu0 %v2574_v42  ;;  %2669 = vmatprep.subr.bf16.mxu1 %v3008_v39 }
  0x4c   :  { %v249_v38 = vand.u32 7, %v169_v32 }
  0x4d   :  { %2156 = vmatmul.mubr.msk.f32.gmra.mrb[6].mxu0 %vm415_vm2, %v3215_v45 }
  0x4e   :  { %2577 = vmatpush3.bf16.msra.mxu0 %v2574_v42  ;;  %2190 = vmatprep.mubr.f32.mxu0 %v3121_v8  ;;  %v614_v8 = vld [vmem:[#allocation5 + $0x20] sm:$0xff]  ;;  %v193_v42 = vand.u32 7, %v3115_v6  ;;  %vm389_vm1 = vcmp.eq.s32.totalorder %v249_v38, %v3224_v36 }
  0x4f   :  { %2579 = vmatprep.subr.bf16.mxu0 %v2578_v46  ;;  %v2610_v12 = vpack.c.bf16 %v615_v11, %v614_v8  ;;  %v824_v11 = vld [vmem:[#allocation5 + $0x150] sm:$0xff] }
  0x50   :  { %vm381_vm5 = vcmp.eq.s32.totalorder %v193_v42, %v3224_v36 }
  0x51   :  { %vm3245_vm7 = vmpackc.low %vm382_vm6, %vm381_vm5  ;;  %vm391_vm6 = vcmp.eq.s32.totalorder %v263_v5, %v3224_v36  ;;  %v1091_v5 = vld [vmem:[%s3536_s2] sm:$0x1] }
  0x52   :  { %2581 = vmatpush3.bf16.msra.mxu0 %v2578_v46  ;;  %v164_v46 = vadd.s32 40, %v3104_v1  ;;  %2671 = vmatpush3.bf16.msk.msra.mxu1 %vm3245_vm7, %v3009_v47 }
  0x53   :  { %2583 = vmatprep.subr.bf16.mxu0 %v2582_v49  ;;  %2672 = vmatprep.subr.bf16.mxu1 %v3008_v39 }
  0x54   :  { %v214_v6 = vand.u32 7, %v164_v46 }
  0x56   :  { %2585 = vmatpush3.bf16.msra.mxu0 %v2582_v49  ;;  %vm384_vm9 = vcmp.eq.s32.totalorder %v214_v6, %v3224_v36  ;;  %v816_v49 = vld [vmem:[#allocation5 + $0x110] sm:$0xff]  ;;  %v270_v6 = vand.u32 7, %v172_v44 }
  0x57   :  { %2587 = vmatprep.subr.bf16.mxu0 %v2586_v52  ;;  %vm3255_vm10 = vmpackc.low %vm384_vm9, %vm383_vm8  ;;  %v2638_v53 = vpack.c.bf16 %v817_v50, %v816_v49  ;;  %v173_v49 = vadd.s32 112, %v3104_v1  ;;  %v174_v50 = vadd.s32 120, %v3104_v1  ;;  %vm3010_vm9 = vmmov 0  }
  0x58   :  { %2674 = vmatpush3.bf16.msk.msra.mxu1 %vm3255_vm10, %v3009_v47  ;;  %vm392_vm8 = vcmp.eq.s32.totalorder %v270_v6, %v3224_v36  ;;  %2304 = vmatprep.mubr.msk.f32.mxu1 %vm3010_vm9, %v3007_v18 }
  0x59   :  { %2675 = vmatprep.subr.bf16.mxu1 %v3008_v39 }
  0x5a   :  { %2589 = vmatpush3.bf16.msra.mxu0 %v2586_v52 }
  0x5b   :  { %2591 = vmatprep.subr.bf16.mxu0 %v2590_v55 }
  0x5e   :  { %2593 = vmatpush3.bf16.msra.mxu0 %v2590_v55  ;;  %v819_v55 = vld [vmem:[#allocation5 + $0x128] sm:$0xff] }
  0x5f   :  { %2595 = vmatprep.subr.bf16.mxu0 %v2594_v58  ;;  %v2642_v57 = vpack.c.bf16 %v819_v55, %v818_v54 }
  0x62   :  { %2597 = vmatpush3.bf16.msra.mxu0 %v2594_v58 }
  0x63   :  { %2599 = vmatprep.subr.bf16.mxu0 %v2598_v61 }
  0x66   :  { %2601 = vmatpush3.bf16.msra.mxu0 %v2598_v61 }
  0x67   :  { %2603 = vmatprep.subr.bf16.mxu0 %v2602_v0 }
  0x69   :  { %2191 = vmatmul.mubr.f32.vlgmr.msra.gmra.mrb[8].mxu0 %v3123_v9  ;;  %v2622_v9 = vpack.c.bf16 %v621_v26, %v620_v23  ;;  %v165_v26 = vadd.s32 48, %v3104_v1 }
  0x6a   :  { %2605 = vmatpush3.bf16.msra.mxu0 %v2602_v0  ;;  %2193 = vmatprep.mubr.f32.mxu0 %v3125_v10  ;;  %v622_v10 = vld [vmem:[#allocation5 + $0x60] sm:$0xff] }
  0x6b   :  { %2607 = vmatprep.subr.bf16.mxu0 %v2606_v7  ;;  %v2626_v28 = vpack.c.bf16 %v623_v27, %v622_v10  ;;  %v822_v0 = vld [vmem:[#allocation5 + $0x140] sm:$0xff]  ;;  %v221_v10 = vand.u32 7, %v165_v26 }
  0x6d   :  { %2194 = vmatmul.mubr.f32.gmra.mrb[10].mxu0 %v3132_v14  ;;  %v625_v14 = vld [vmem:[#allocation5 + $0x78] sm:$0xff]  ;;  %vm385_vm11 = vcmp.eq.s32.totalorder %v221_v10, %v3224_v36 }
  0x6e   :  { %2609 = vmatpush3.bf16.msra.mxu0 %v2606_v7  ;;  %v2630_v30 = vpack.c.bf16 %v625_v14, %v624_v29  ;;  %v2650_v7 = vpack.c.bf16 %v823_v3, %v822_v0  ;;  %v168_v29 = vadd.s32 72, %v3104_v1 }
  0x6f   :  { %2611 = vmatprep.subr.bf16.mxu0 %v2610_v12 }
  0x70   :  { %v242_v31 = vand.u32 7, %v168_v29 }
  0x72   :  { %2613 = vmatpush3.bf16.msra.mxu0 %v2610_v12  ;;  %v825_v12 = vld [vmem:[#allocation5 + $0x158] sm:$0xff]  ;;  %vm388_vm15 = vcmp.eq.s32.totalorder %v242_v31, %v3224_v36 }
  0x73   :  { %2615 = vmatprep.subr.bf16.mxu0 %v2614_v17  ;;  %v2654_v13 = vpack.c.bf16 %v825_v12, %v824_v11 }
  0x76   :  { %2617 = vmatpush3.bf16.msra.mxu0 %v2614_v17  ;;  %v827_v17 = vld [vmem:[#allocation5 + $0x168] sm:$0xff] }
  0x77   :  { %2619 = vmatprep.subr.bf16.mxu0 %v2618_v22  ;;  %v2658_v20 = vpack.c.bf16 %v827_v17, %v826_v15 }
  0x7a   :  { %2621 = vmatpush3.bf16.msra.mxu0 %v2618_v22  ;;  %v829_v22 = vld [vmem:[#allocation5 + $0x178] sm:$0xff] }
  0x7b   :  { %2623 = vmatprep.subr.bf16.mxu0 %v2622_v9  ;;  %v2662_v23 = vpack.c.bf16 %v829_v22, %v828_v21 }
  0x7e   :  { %2625 = vmatpush3.bf16.msra.mxu0 %v2622_v9  ;;  %v166_v9 = vadd.s32 56, %v3104_v1 }
  0x7f   :  { %2627 = vmatprep.subr.bf16.mxu0 %v2626_v28 }
  0x80   :  { %v228_v27 = vand.u32 7, %v166_v9 }
  0x82   :  { %2629 = vmatpush3.bf16.msra.mxu0 %v2626_v28  ;;  %vm386_vm12 = vcmp.eq.s32.totalorder %v228_v27, %v3224_v36  ;;  %v167_v28 = vadd.s32 64, %v3104_v1 }
  0x83   :  { %2631 = vmatprep.subr.bf16.mxu0 %v2630_v30  ;;  %vm3282_vm13 = vmpackc.low %vm386_vm12, %vm385_vm11 }
  0x84   :  { %2677 = vmatpush3.bf16.msk.msra.mxu1 %vm3282_vm13, %v3009_v47  ;;  %vm3334_vm11 = vmpackc.low %vm392_vm8, %vm391_vm6 }
  0x85   :  { %2678 = vmatprep.subr.bf16.mxu1 %v3008_v39 }
  0x86   :  { %2633 = vmatpush3.bf16.msra.mxu0 %v2630_v30  ;;  %v235_v30 = vand.u32 7, %v167_v28 }
  0x87   :  { %2635 = vmatprep.subr.bf16.mxu0 %v2634_v35 }
  0x88   :  { %vm387_vm14 = vcmp.eq.s32.totalorder %v235_v30, %v3224_v36 }
  0x89   :  { %vm3298_vm0 = vmpackc.low %vm388_vm15, %vm387_vm14 }
  0x8a   :  { %2680 = vmatpush3.bf16.msk.msra.mxu1 %vm3298_vm0, %v3009_v47 }
  0x8b   :  { %2681 = vmatprep.subr.bf16.mxu1 %v3008_v39 }
 0x114   :  { %v2140_v51 = vpop.f32.mrb[0].mxu0 }
 0x115   :  { %v494_v52 = vpop.f32.mrb[1].mxu0 }
 0x116   :  { %2228 = vmatprep.mubr.f32.mxu0 %v494_v52  ;;  %v277_v52 = vand.u32 7, %v173_v49 }
 0x117   :  { %2229 = vmatmul.mubr.f32.vlgmr.msra.gmra.mrb[8].mxu0 %v2140_v51 }
 0x118   :  { %2637 = vmatpush3.bf16.msra.mxu0 %v2634_v35  ;;  %v2143_v56 = vpop.f32.mrb[2].mxu0  ;;  %v170_v35 = vadd.s32 88, %v3104_v1  ;;  %vm393_vm12 = vcmp.eq.s32.totalorder %v277_v52, %v3224_v36 }
 0x119   :  { %2639 = vmatprep.subr.bf16.mxu0 %v2638_v53  ;;  %v504_v58 = vpop.f32.mrb[3].mxu0 }
 0x11a   :  { %2231 = vmatprep.mubr.f32.mxu0 %v504_v58  ;;  %v256_v42 = vand.u32 7, %v170_v35 }
 0x11b   :  { %2232 = vmatmul.mubr.f32.gmra.mrb[10].mxu0 %v2143_v56 }
 0x11c   :  { %2641 = vmatpush3.bf16.msra.mxu0 %v2638_v53  ;;  %v2154_v61 = vpop.f32.mrb[4].mxu0  ;;  %vm390_vm3 = vcmp.eq.s32.totalorder %v256_v42, %v3224_v36  ;;  %v284_v53 = vand.u32 7, %v174_v50  ;;  %v1095_v50 = vld [vmem:[%s3537_s3] sm:$0x1] }
 0x11d   :  { %2643 = vmatprep.subr.bf16.mxu0 %v2642_v57  ;;  %v591_v63 = vpop.f32.mrb[5].mxu0  ;;  %vm3314_vm5 = vmpackc.low %vm390_vm3, %vm389_vm1 }
 0x11e   :  { %2266 = vmatprep.mubr.f32.mxu0 %v591_v63  ;;  %2683 = vmatpush3.bf16.msk.msra.mxu1 %vm3314_vm5, %v3009_v47  ;;  %vm394_vm14 = vcmp.eq.s32.totalorder %v284_v53, %v3224_v36 }
 0x11f   :  { %2684 = vmatprep.subr.bf16.mxu1 %v3008_v39  ;;  %vm3348_vm15 = vmpackc.low %vm394_vm14, %vm393_vm12 }
 0x120   :  { %2645 = vmatpush3.bf16.msra.mxu0 %v2642_v57  ;;  %v2157_v4 = vpop.f32.mrb[6].mxu0 }
 0x121   :  { %2647 = vmatprep.subr.bf16.mxu0 %v2646_v62  ;;  %v601_v8 = vpop.f32.mrb[7].mxu0 }
 0x122   :  { %2686 = vmatpush3.bf16.msk.msra.mxu1 %vm3334_vm11, %v3009_v47 }
 0x123   :  { %2687 = vmatprep.subr.bf16.mxu1 %v3008_v39 }
 0x124   :  { %2649 = vmatpush3.bf16.msra.mxu0 %v2646_v62 }
 0x125   :  { %2651 = vmatprep.subr.bf16.mxu0 %v2650_v7 }
 0x126   :  { %2689 = vmatpush3.bf16.msk.msra.mxu1 %vm3348_vm15, %v3009_v47 }
 0x127   :  { %2690 = vmatprep.subr.bf16.mxu1 %v3008_v39 }
 0x128   :  { %2653 = vmatpush3.bf16.msra.mxu0 %v2650_v7  ;;  %v3406_v7 = vsub.s32 0, %v3104_v1 }
 0x129   :  { %2655 = vmatprep.subr.bf16.mxu0 %v2654_v13 }
 0x12c   :  { %2657 = vmatpush3.bf16.msra.mxu0 %v2654_v13 }
 0x12d   :  { %2659 = vmatprep.subr.bf16.mxu0 %v2658_v20 }
 0x130   :  { %2661 = vmatpush3.bf16.msra.mxu0 %v2658_v20 }
 0x131   :  { %2663 = vmatprep.subr.bf16.mxu0 %v2662_v23 }
 0x134   :  { %2665 = vmatpush3.bf16.msra.mxu0 %v2662_v23 }
 0x135   :  { %2826 = vmatprep.subr.bf16.mxu0 %v3008_v39 }
 0x137   :  { %2267 = vmatmul.mubr.f32.vlgmr.msra.gmra.mrb[8].mxu0 %v2154_v61 }
 0x138   :  { %2269 = vmatprep.mubr.f32.mxu0 %v601_v8  ;;  %2828 = vmatpush3.bf16.msk.msra.mxu0 %vm3235_vm4, %v3009_v47 }
 0x139   :  { %2829 = vmatprep.subr.bf16.mxu0 %v3008_v39 }
 0x13b   :  { %2270 = vmatmul.mubr.f32.gmra.mrb[10].mxu0 %v2157_v4 }
 0x13c   :  { %2831 = vmatpush3.bf16.msk.msra.mxu0 %vm3245_vm7, %v3009_v47  ;;  %2516 = vmatprep.mubr.msk.f32.mxu0 %vm3010_vm9, %v3007_v18 }
 0x13d   :  { %2832 = vmatprep.subr.bf16.mxu0 %v3008_v39 }
 0x140   :  { %2834 = vmatpush3.bf16.msk.msra.mxu0 %vm3255_vm10, %v3009_v47 }
 0x141   :  { %2835 = vmatprep.subr.bf16.mxu0 %v3008_v39 }
 0x144   :  { %2837 = vmatpush3.bf16.msk.msra.mxu0 %vm3282_vm13, %v3009_v47 }
 0x145   :  { %2838 = vmatprep.subr.bf16.mxu0 %v3008_v39 }
 0x148   :  { %2840 = vmatpush3.bf16.msk.msra.mxu0 %vm3298_vm0, %v3009_v47 }
 0x149   :  { %2841 = vmatprep.subr.bf16.mxu0 %v3008_v39 }
 0x14c   :  { %2843 = vmatpush3.bf16.msk.msra.mxu0 %vm3314_vm5, %v3009_v47 }
 0x14d   :  { %2844 = vmatprep.subr.bf16.mxu0 %v3008_v39 }
 0x150   :  { %2846 = vmatpush3.bf16.msk.msra.mxu0 %vm3334_vm11, %v3009_v47 }
 0x151   :  { %2847 = vmatprep.subr.bf16.mxu0 %v3008_v39 }
 0x154   :  { %2849 = vmatpush3.bf16.msk.msra.mxu0 %vm3348_vm15, %v3009_v47 }
 0x155   :  { %2850 = vmatprep.subr.bf16.mxu0 %v3008_v39 }
 0x20a   :  { %v3360_v55 = vpop.f32.mrb[8].mxu0 }
 0x20b   :  { %v3362_v36 = vpop.f32.mrb[9].mxu0 }
 0x20c   :  { %v919_v56 = vadd.f32 %v3360_v55, %v3362_v36 }
 0x20e   :  { %v3366_v57 = vpop.f32.mrb[10].mxu0 }
 0x20f   :  { %v3368_v58 = vpop.f32.mrb[11].mxu0 }
 0x210   :  { %v920_v59 = vadd.f32 %v919_v56, %v3368_v58 }
 0x212   :  { %v921_v60 = vadd.f32 %v3366_v57, %v920_v59 }
 0x214   :  { %v922_v61 = vrot.slane %v921_v60, 4 }
 0x216   :  { %v923_v62 = vadd.f32 %v922_v61, %v921_v60 }
 0x218   :  { %v924_v63 = vrot.slane %v923_v62, 2 }
 0x21a   :  { %v925_v0 = vadd.f32 %v924_v63, %v923_v62 }
 0x21c   :  { %v926_v3 = vrot.slane %v925_v0, 1 }
 0x21e   :  { %v927_v4 = vadd.f32 %v926_v3, %v925_v0 }
 0x220   :  { %2305 = vmatmul.mubr.f32.vlgmr.msra.gmra.mrb[0].mxu1 %v927_v4 }
 0x221   :  { %2692 = vmatpush3.bf16.msk.msra.mxu1 %vm3235_vm4, %v3009_v47  ;;  %2339 = vmatprep.mubr.msk.f32.mxu1 %vm3010_vm9, %v3007_v18 }
 0x222   :  { %2693 = vmatprep.subr.bf16.mxu1 %v3008_v39 }
 0x225   :  { %2695 = vmatpush3.bf16.msk.msra.mxu1 %vm3245_vm7, %v3009_v47 }
 0x226   :  { %2696 = vmatprep.subr.bf16.mxu1 %v3008_v39 }
 0x229   :  { %2698 = vmatpush3.bf16.msk.msra.mxu1 %vm3255_vm10, %v3009_v47 }
 0x22a   :  { %2699 = vmatprep.subr.bf16.mxu1 %v3008_v39 }
 0x22d   :  { %2701 = vmatpush3.bf16.msk.msra.mxu1 %vm3282_vm13, %v3009_v47 }
 0x22e   :  { %2702 = vmatprep.subr.bf16.mxu1 %v3008_v39 }
 0x231   :  { %2704 = vmatpush3.bf16.msk.msra.mxu1 %vm3298_vm0, %v3009_v47 }
 0x232   :  { %2705 = vmatprep.subr.bf16.mxu1 %v3008_v39 }
 0x235   :  { %2707 = vmatpush3.bf16.msk.msra.mxu1 %vm3314_vm5, %v3009_v47 }
 0x236   :  { %2708 = vmatprep.subr.bf16.mxu1 %v3008_v39 }
 0x239   :  { %2710 = vmatpush3.bf16.msk.msra.mxu1 %vm3334_vm11, %v3009_v47 }
 0x23a   :  { %2711 = vmatprep.subr.bf16.mxu1 %v3008_v39 }
 0x23d   :  { %2713 = vmatpush3.bf16.msk.msra.mxu1 %vm3348_vm15, %v3009_v47 }
 0x2f3   :  { %v994_v8 = vpop.f32.mrb[0].mxu1 }
 0x2f4   :  { %v998_v11 = vmul.f32 0.001953125, %v994_v8  ;;  %v2306_v12 = vpop.f32.mrb[1].mxu1 }
 0x2f5   :  { %v1309_v12 = vld [vmem:[#allocation7 + $0x80] sm:$0xff] }
 0x2f6   :  { %v1002_v13 = vrot.slane %v998_v11, %v3406_v7 }
 0x2f8   :  { %v1003_v15 = vsub.f32 %v3362_v36, %v1002_v13  ;;  %v1004_v17 = vsub.f32 %v3360_v55, %v1002_v13  ;;  %v1005_v20 = vsub.f32 %v3368_v58, %v1002_v13  ;;  %v1006_v21 = vsub.f32 %v3366_v57, %v1002_v13  ;;  %v1310_v13 = vld [vmem:[#allocation7 + $0x88] sm:$0xff] }
 0x2fa   :  { %v1007_v22 = vmul.f32 %v1003_v15, %v1003_v15  ;;  %v1008_v23 = vmul.f32 %v1004_v17, %v1004_v17  ;;  %v1009_v26 = vmul.f32 %v1005_v20, %v1005_v20  ;;  %v1010_v10 = vmul.f32 %v1006_v21, %v1006_v21  ;;  %v1311_v17 = vld [vmem:[#allocation7 + $0x90] sm:$0xff]  ;;  %v1312_v20 = vld [vmem:[#allocation7 + $0x98] sm:$0xff] }
 0x2fb   :  { %v2730_v15 = vpack.c.bf16 %v1310_v13, %v1309_v12  ;;  %v2734_v21 = vpack.c.bf16 %v1312_v20, %v1311_v17  ;;  %v1499_v12 = vld [vmem:[#allocation7 + $0x118] sm:$0xff]  ;;  %v1500_v20 = vld [vmem:[#allocation7 + $0x120] sm:$0xff] }
 0x2fc   :  { %v1011_v9 = vadd.f32 %v1008_v23, %v1007_v22  ;;  %v1313_v22 = vld [vmem:[#allocation7 + $0xa0] sm:$0xff]  ;;  %v1314_v23 = vld [vmem:[#allocation7 + $0xa8] sm:$0xff] }
 0x2fe   :  { %v1012_v1 = vadd.f32 %v1011_v9, %v1009_v26  ;;  %v1316_v26 = vld [vmem:[#allocation7 + $0xb8] sm:$0xff]  ;;  %v1318_v9 = vld [vmem:[#allocation7 + $0xc8] sm:$0xff] }
 0x300   :  { %v1013_v27 = vadd.f32 %v1012_v1, %v1010_v10  ;;  %v1319_v10 = vld [vmem:[#allocation7 + $0xd0] sm:$0xff]  ;;  %v1320_v1 = vld [vmem:[#allocation7 + $0xd8] sm:$0xff] }
 0x302   :  { %v1014_v28 = vrot.slane %v1013_v27, 4 }
 0x304   :  { %v1015_v29 = vadd.f32 %v1014_v28, %v1013_v27  ;;  %v1321_v27 = vld [vmem:[#allocation7 + $0xe0] sm:$0xff]  ;;  %v1322_v28 = vld [vmem:[#allocation7 + $0xe8] sm:$0xff] }
 0x306   :  { %v1016_v30 = vrot.slane %v1015_v29, 2 }
 0x308   :  { %v1017_v31 = vadd.f32 %v1016_v30, %v1015_v29  ;;  %v2754_v29 = vpack.c.bf16 %v1322_v28, %v1321_v27  ;;  %v1324_v30 = vld [vmem:[#allocation7 + $0xf8] sm:$0xff]  ;;  %v1506_v28 = vld [vmem:[#allocation7 + $0x150] sm:$0xff] }
 0x30a   :  { %v1018_v32 = vrot.slane %v1017_v31, 1 }
 0x30c   :  { %v1019_v35 = vadd.f32 %v1018_v32, %v1017_v31  ;;  %v1292_v32 = vld [vmem:[#allocation7] sm:$0xff] }
 0x30e   :  { %2340 = vmatmul.mubr.f32.vlgmr.msra.gmra.mrb[2].mxu1 %v1019_v35  ;;  %v1293_v35 = vld [vmem:[#allocation7 + $0x8] sm:$0xff] }
 0x30f   :  { %2350 = vmatprep.mubr.msk.f32.mxu1 %vm415_vm2, %v3144_v19 }
 0x3e1   :  { %v1086_v38 = vpop.f32.mrb[2].mxu1 }
 0x3e2   :  { %v1090_v42 = vmul.f32 0.001953125, %v1086_v38  ;;  %v2341_v43 = vpop.f32.mrb[3].mxu1  ;;  %v2762_v38 = vpack.c.bf16 %v1293_v35, %v1292_v32  ;;  %v1510_v35 = vld [vmem:[#allocation7 + $0x170] sm:$0xff] }
 0x3e3   :  { %v1295_v43 = vld [vmem:[#allocation7 + $0x18] sm:$0xff] }
 0x3e4   :  { %v1092_v44 = vadd.f32 1e-05, %v1090_v42  ;;  %v1294_v42 = vld [vmem:[#allocation7 + $0x10] sm:$0xff] }
 0x3e6   :  { %2900 = vrsqrt.f32 %v1092_v44  ;;  %v2766_v44 = vpack.c.bf16 %v1295_v43, %v1294_v42 }
 0x3f0   :  { %v2901_v6 = vpop.eup %2900 }
 0x3f1   :  { %v1094_v49 = vmul.f32 %v2901_v6, %v1091_v5  ;;  %v1296_v5 = vld [vmem:[#allocation7 + $0x20] sm:$0xff]  ;;  %v1297_v6 = vld [vmem:[#allocation7 + $0x28] sm:$0xff] }
 0x3f3   :  { %v1096_v52 = vmul.f32 %v1094_v49, %v998_v11  ;;  %v1102_v53 = vrot.slane %v1094_v49, %v3406_v7  ;;  %v2770_v49 = vpack.c.bf16 %v1297_v6, %v1296_v5 }
 0x3f5   :  { %v1097_v56 = vsub.f32 %v1095_v50, %v1096_v52  ;;  %v1104_v19 = vmul.f32 %v1102_v53, %v3362_v36  ;;  %v1105_v59 = vmul.f32 %v3360_v55, %v1102_v53  ;;  %v1106_v60 = vmul.f32 %v1102_v53, %v3368_v58  ;;  %v1298_v50 = vld [vmem:[#allocation7 + $0x30] sm:$0xff]  ;;  %v1299_v52 = vld [vmem:[#allocation7 + $0x38] sm:$0xff] }
 0x3f6   :  { %v1107_v61 = vmul.f32 %v3366_v57, %v1102_v53  ;;  %v2774_v53 = vpack.c.bf16 %v1299_v52, %v1298_v50 }
 0x3f7   :  { %v1112_v62 = vrot.slane %v1097_v56, %v3406_v7  ;;  %v1300_v56 = vld [vmem:[#allocation7 + $0x40] sm:$0xff] }
 0x3f9   :  { %v1114_v63 = vadd.f32 %v1112_v62, %v1104_v19  ;;  %v3427_v0 = vadd.f32 %v1112_v62, %v1105_v59  ;;  %v3429_v3 = vadd.f32 %v1112_v62, %v1106_v60  ;;  %v3431_v4 = vadd.f32 %v1112_v62, %v1107_v61  ;;  %v1301_v19 = vld [vmem:[#allocation7 + $0x48] sm:$0xff]  ;;  %v1302_v60 = vld [vmem:[#allocation7 + $0x50] sm:$0xff]  ;;  %v1303_v61 = vld [vmem:[#allocation7 + $0x58] sm:$0xff] }
 0x3fa   :  { %v2778_v59 = vpack.c.bf16 %v1301_v19, %v1300_v56  ;;  %v2782_v62 = vpack.c.bf16 %v1303_v61, %v1302_v60 }
 0x3fb   :  { %v1118_v8 = vmax.f32 %v1114_v63, 0.0  ;;  %v1119_v11 = vmax.f32 %v3427_v0, 0.0  ;;  %v1120_v36 = vmax.f32 %v3429_v3, 0.0  ;;  %v1121_v55 = vmax.f32 %v3431_v4, 0.0  ;;  %v1304_v63 = vld [vmem:[#allocation7 + $0x60] sm:$0xff]  ;;  %v1305_v0 = vld [vmem:[#allocation7 + $0x68] sm:$0xff] }
 0x3fc   :  { %v2786_v3 = vpack.c.bf16 %v1305_v0, %v1304_v63  ;;  %v1306_v4 = vld [vmem:[#allocation7 + $0x70] sm:$0xff] }
 0x3fd   :  { %v2714_v58 = vpack.c.bf16 %v1119_v11, %v1118_v8  ;;  %v2718_v57 = vpack.c.bf16 %v1121_v55, %v1120_v36 }
 0x3ff   :  { %2715 = vmatprep.subr.bf16.mxu1 %v2714_v58 }
 0x400   :  { %2717 = vmatpush3.bf16.msra.mxu1 %v2714_v58 }
 0x401   :  { %2719 = vmatprep.subr.bf16.mxu1 %v2718_v57 }
 0x404   :  { %2721 = vmatpush3.bf16.msra.mxu1 %v2718_v57 }
 0x405   :  { %2723 = vmatprep.subr.bf16.mxu1 %v2714_v58 }
 0x407   :  { %2351 = vmatmul.mubr.msk.f32.vlgmr.msra.gmra.mrb[4].mxu1 %vm415_vm2, %v3156_v24  ;;  %v2738_v24 = vpack.c.bf16 %v1314_v23, %v1313_v22 }
 0x408   :  { %2725 = vmatpush3.bf16.msra.mxu1 %v2714_v58  ;;  %2353 = vmatprep.mubr.msk.f32.mxu1 %vm415_vm2, %v3159_v25  ;;  %v1315_v25 = vld [vmem:[#allocation7 + $0xb0] sm:$0xff] }
 0x409   :  { %2727 = vmatprep.subr.bf16.mxu1 %v2718_v57 }
 0x40b   :  { %2354 = vmatmul.mubr.msk.f32.gmra.mrb[6].mxu1 %vm415_vm2, %v3179_v33  ;;  %v2742_v33 = vpack.c.bf16 %v1316_v26, %v1315_v25  ;;  %v1502_v25 = vld [vmem:[#allocation7 + $0x130] sm:$0xff]  ;;  %v1503_v26 = vld [vmem:[#allocation7 + $0x138] sm:$0xff] }
 0x40c   :  { %2729 = vmatpush3.bf16.msra.mxu1 %v2718_v57  ;;  %2364 = vmatprep.mubr.msk.f32.mxu1 %vm415_vm2, %v3182_v34  ;;  %v1317_v34 = vld [vmem:[#allocation7 + $0xc0] sm:$0xff]  ;;  %v1498_v57 = vld [vmem:[#allocation7 + $0x110] sm:$0xff] }
 0x40d   :  { %2731 = vmatprep.subr.bf16.mxu1 %v2730_v15  ;;  %v2798_v17 = vpack.c.bf16 %v1499_v12, %v1498_v57 }
 0x40f   :  { %2365 = vmatmul.mubr.msk.f32.vlgmr.msra.gmra.mrb[8].mxu1 %vm415_vm2, %v3201_v40  ;;  %v2746_v40 = vpack.c.bf16 %v1318_v9, %v1317_v34  ;;  %v2806_v34 = vpack.c.bf16 %v1503_v26, %v1502_v25 }
 0x410   :  { %2733 = vmatpush3.bf16.msra.mxu1 %v2730_v15  ;;  %2367 = vmatprep.mubr.msk.f32.mxu1 %vm415_vm2, %v3204_v41  ;;  %v2750_v41 = vpack.c.bf16 %v1320_v1, %v1319_v10  ;;  %v1505_v10 = vld [vmem:[#allocation7 + $0x148] sm:$0xff] }
 0x411   :  { %2735 = vmatprep.subr.bf16.mxu1 %v2734_v21 }
 0x413   :  { %2368 = vmatmul.mubr.msk.f32.gmra.mrb[10].mxu1 %vm415_vm2, %v3215_v45  ;;  %v1323_v45 = vld [vmem:[#allocation7 + $0xf0] sm:$0xff] }
 0x414   :  { %2737 = vmatpush3.bf16.msra.mxu1 %v2734_v21  ;;  %2402 = vmatprep.mubr.f32.mxu1 %v1118_v8  ;;  %v2758_v31 = vpack.c.bf16 %v1324_v30, %v1323_v45  ;;  %v1307_v8 = vld [vmem:[#allocation7 + $0x78] sm:$0xff]  ;;  %v1501_v21 = vld [vmem:[#allocation7 + $0x128] sm:$0xff]  ;;  %v1508_v30 = vld [vmem:[#allocation7 + $0x160] sm:$0xff] }
 0x415   :  { %2739 = vmatprep.subr.bf16.mxu1 %v2738_v24  ;;  %v2802_v23 = vpack.c.bf16 %v1501_v21, %v1500_v20 }
 0x418   :  { %2741 = vmatpush3.bf16.msra.mxu1 %v2738_v24 }
 0x419   :  { %2743 = vmatprep.subr.bf16.mxu1 %v2742_v33 }
 0x41c   :  { %2745 = vmatpush3.bf16.msra.mxu1 %v2742_v33 }
 0x41d   :  { %2747 = vmatprep.subr.bf16.mxu1 %v2746_v40 }
 0x420   :  { %2749 = vmatpush3.bf16.msra.mxu1 %v2746_v40  ;;  %v1504_v40 = vld [vmem:[#allocation7 + $0x140] sm:$0xff] }
 0x421   :  { %2751 = vmatprep.subr.bf16.mxu1 %v2750_v41 }
 0x424   :  { %2753 = vmatpush3.bf16.msra.mxu1 %v2750_v41  ;;  %v2810_v41 = vpack.c.bf16 %v1505_v10, %v1504_v40 }
 0x425   :  { %2755 = vmatprep.subr.bf16.mxu1 %v2754_v29 }
 0x428   :  { %2757 = vmatpush3.bf16.msra.mxu1 %v2754_v29  ;;  %v1507_v29 = vld [vmem:[#allocation7 + $0x158] sm:$0xff] }
 0x429   :  { %2759 = vmatprep.subr.bf16.mxu1 %v2758_v31  ;;  %v2814_v45 = vpack.c.bf16 %v1507_v29, %v1506_v28  ;;  %v2904_v28 = vld [vmem:[#allocation2] sm:$0xff] }
 0x42c   :  { %2761 = vmatpush3.bf16.msra.mxu1 %v2758_v31  ;;  %v1509_v31 = vld [vmem:[#allocation7 + $0x168] sm:$0xff] }
 0x42d   :  { %2763 = vmatprep.subr.bf16.mxu1 %v2762_v38  ;;  %v2818_v32 = vpack.c.bf16 %v1509_v31, %v1508_v30  ;;  %v2906_v31 = vld [vmem:[#allocation2 + $0x10] sm:$0xff] }
 0x42f   :  { %2403 = vmatmul.mubr.f32.vlgmr.msra.gmra.mrb[12].mxu1 %v1119_v11  ;;  %v2790_v11 = vpack.c.bf16 %v1307_v8, %v1306_v4 }
 0x430   :  { %2405 = vmatprep.mubr.f32.mxu1 %v1120_v36  ;;  %2765 = vmatpush3.bf16.msra.mxu1 %v2762_v38  ;;  %v1496_v36 = vld [vmem:[#allocation7 + $0x100] sm:$0xff]  ;;  %v1511_v38 = vld [vmem:[#allocation7 + $0x178] sm:$0xff] }
 0x431   :  { %2767 = vmatprep.subr.bf16.mxu1 %v2766_v44  ;;  %v2822_v42 = vpack.c.bf16 %v1511_v38, %v1510_v35  ;;  %v2907_v35 = vld [vmem:[#allocation2 + $0x18] sm:$0xff] }
 0x433   :  { %2406 = vmatmul.mubr.f32.gmra.mrb[14].mxu1 %v1121_v55  ;;  %v1497_v55 = vld [vmem:[#allocation7 + $0x108] sm:$0xff] }
 0x434   :  { %2769 = vmatpush3.bf16.msra.mxu1 %v2766_v44  ;;  %v2794_v58 = vpack.c.bf16 %v1497_v55, %v1496_v36 }
 0x435   :  { %2771 = vmatprep.subr.bf16.mxu1 %v2770_v49 }
 0x438   :  { %2773 = vmatpush3.bf16.msra.mxu1 %v2770_v49 }
 0x439   :  { %2775 = vmatprep.subr.bf16.mxu1 %v2774_v53 }
 0x43c   :  { %2777 = vmatpush3.bf16.msra.mxu1 %v2774_v53 }
 0x43d   :  { %2779 = vmatprep.subr.bf16.mxu1 %v2778_v59 }
 0x440   :  { %2781 = vmatpush3.bf16.msra.mxu1 %v2778_v59 }
 0x441   :  { %2783 = vmatprep.subr.bf16.mxu1 %v2782_v62 }
 0x444   :  { %2785 = vmatpush3.bf16.msra.mxu1 %v2782_v62 }
 0x445   :  { %2787 = vmatprep.subr.bf16.mxu1 %v2786_v3 }
 0x448   :  { %2789 = vmatpush3.bf16.msra.mxu1 %v2786_v3 }
 0x449   :  { %2791 = vmatprep.subr.bf16.mxu1 %v2790_v11 }
 0x44c   :  { %2793 = vmatpush3.bf16.msra.mxu1 %v2790_v11 }
 0x44d   :  { %2795 = vmatprep.subr.bf16.mxu1 %v2794_v58 }
 0x4da   :  { %v2352_v13 = vpop.f32.mrb[4].mxu1 }
 0x4db   :  { %v1188_v15 = vpop.f32.mrb[5].mxu1 }
 0x4dc   :  { %2440 = vmatprep.mubr.f32.mxu1 %v1188_v15 }
 0x4dd   :  { %2441 = vmatmul.mubr.f32.vlgmr.msra.gmra.mrb[12].mxu1 %v2352_v13 }
 0x4de   :  { %2797 = vmatpush3.bf16.msra.mxu1 %v2794_v58  ;;  %v2355_v22 = vpop.f32.mrb[6].mxu1 }
 0x4df   :  { %2799 = vmatprep.subr.bf16.mxu1 %v2798_v17  ;;  %v1198_v24 = vpop.f32.mrb[7].mxu1 }
 0x4e0   :  { %2443 = vmatprep.mubr.f32.mxu1 %v1198_v24 }
 0x4e1   :  { %2444 = vmatmul.mubr.f32.gmra.mrb[14].mxu1 %v2355_v22  ;;  %v1777_v22 = vld [vmem:[%s3540_s6] sm:$0x1] }
 0x4e2   :  { %2801 = vmatpush3.bf16.msra.mxu1 %v2798_v17  ;;  %v2366_v33 = vpop.f32.mrb[8].mxu1  ;;  %v1773_v17 = vld [vmem:[%s3539_s5] sm:$0x1]  ;;  %s3011_s5 = smov [#allocation8]  }
 0x4e3   :  { %2803 = vmatprep.subr.bf16.mxu1 %v2802_v23  ;;  %v1273_v9 = vpop.f32.mrb[9].mxu1  ;;  %s1817_s21 = sshll.u32 %s3011_s5, 4  ;;  %s1818_s21 = int_to_ptr.vmem [resolvable:$true] %s1817_s21 }
 0x4e4   :  { %2478 = vmatprep.mubr.f32.mxu1 %v1273_v9  ;;  %s2974_s6 = scalar_lea.vmem %s1818_s21, 512  ;;  %p2979_p11 = scmp.lt.s32.totalorder %s1818_s21, %s1818_s21 }
 0x4e5   :  { %p2975_p10 = scmp.ne.s32.totalorder %s1818_s21, %s2974_s6  ;;  %p2980_p12 = scmp.lt.s32.totalorder %s2974_s6, %s2974_s6 }
 0x4e6   :  { %2805 = vmatpush3.bf16.msra.mxu1 %v2802_v23  ;;  %v2369_v1 = vpop.f32.mrb[10].mxu1 }
 0x4e7   :  { %2807 = vmatprep.subr.bf16.mxu1 %v2806_v34  ;;  %v1283_v27 = vpop.f32.mrb[11].mxu1  ;;  %p2981_p13 = por %p2980_p12, %p2979_p11 }
 0x4e9   :  { %p2982_p0 = pnand %p2981_p13, %p2975_p10 }
 0x4ea   :  { %2809 = vmatpush3.bf16.msra.mxu1 %v2806_v34 }
 0x4eb   :  { %2811 = vmatprep.subr.bf16.mxu1 %v2810_v41 }
 0x4ee   :  { %2813 = vmatpush3.bf16.msra.mxu1 %v2810_v41 }
 0x4ef   :  { %2815 = vmatprep.subr.bf16.mxu1 %v2814_v45 }
 0x4f2   :  { %2817 = vmatpush3.bf16.msra.mxu1 %v2814_v45  ;;  %v2905_v45 = vld [vmem:[#allocation2 + $0x8] sm:$0xff] }
 0x4f3   :  { %2819 = vmatprep.subr.bf16.mxu1 %v2818_v32 }
 0x4f6   :  { %2821 = vmatpush3.bf16.msra.mxu1 %v2818_v32 }
 0x4f7   :  { %2823 = vmatprep.subr.bf16.mxu1 %v2822_v42 }
 0x4fa   :  { %2825 = vmatpush3.bf16.msra.mxu1 %v2822_v42 }
 0x4fd   :  { %2479 = vmatmul.mubr.f32.vlgmr.msra.gmra.mrb[12].mxu1 %v2366_v33 }
 0x4fe   :  { %2481 = vmatprep.mubr.f32.mxu1 %v1283_v27 }
 0x501   :  { %2482 = vmatmul.mubr.f32.gmra.mrb[14].mxu1 %v2369_v1 }
 0x5d0   :  { %v3462_v43 = vpop.f32.mrb[12].mxu1 }
 0x5d1   :  { %v3464_v44 = vpop.f32.mrb[13].mxu1 }
 0x5d2   :  { %v1601_v5 = vadd.f32 %v3462_v43, %v3464_v44 }
 0x5d4   :  { %v3468_v6 = vpop.f32.mrb[14].mxu1 }
 0x5d5   :  { %v1588_v49 = vpop.f32.mrb[15].mxu1 }
 0x5d6   :  { %v1602_v50 = vadd.f32 %v1601_v5, %v1588_v49 }
 0x5d8   :  { %v1603_v52 = vadd.f32 %v3468_v6, %v1602_v50 }
 0x5da   :  { %v1604_v53 = vrot.slane %v1603_v52, 4 }
 0x5dc   :  { %v1605_v56 = vadd.f32 %v1604_v53, %v1603_v52 }
 0x5de   :  { %v1606_v19 = vrot.slane %v1605_v56, 2 }
 0x5e0   :  { %v1607_v59 = vadd.f32 %v1606_v19, %v1605_v56 }
 0x5e2   :  { %v1608_v60 = vrot.slane %v1607_v59, 1 }
 0x5e4   :  { %v1609_v61 = vadd.f32 %v1608_v60, %v1607_v59 }
 0x5e6   :  { %2517 = vmatmul.mubr.f32.vlgmr.msra.gmra.mrb[12].mxu0 %v1609_v61 }
 0x5e7   :  { %2852 = vmatpush3.bf16.msk.msra.mxu0 %vm3235_vm4, %v3009_v47  ;;  %2551 = vmatprep.mubr.msk.f32.mxu0 %vm3010_vm9, %v3007_v18 }
 0x5e8   :  { %2853 = vmatprep.subr.bf16.mxu0 %v3008_v39 }
 0x5eb   :  { %2855 = vmatpush3.bf16.msk.msra.mxu0 %vm3245_vm7, %v3009_v47 }
 0x5ec   :  { %2856 = vmatprep.subr.bf16.mxu0 %v3008_v39 }
 0x5ef   :  { %2858 = vmatpush3.bf16.msk.msra.mxu0 %vm3255_vm10, %v3009_v47 }
 0x5f0   :  { %2859 = vmatprep.subr.bf16.mxu0 %v3008_v39 }
 0x5f3   :  { %2861 = vmatpush3.bf16.msk.msra.mxu0 %vm3282_vm13, %v3009_v47 }
 0x5f4   :  { %2862 = vmatprep.subr.bf16.mxu0 %v3008_v39 }
 0x5f7   :  { %2864 = vmatpush3.bf16.msk.msra.mxu0 %vm3298_vm0, %v3009_v47 }
 0x5f8   :  { %2865 = vmatprep.subr.bf16.mxu0 %v3008_v39 }
 0x5fb   :  { %2867 = vmatpush3.bf16.msk.msra.mxu0 %vm3314_vm5, %v3009_v47 }
 0x5fc   :  { %2868 = vmatprep.subr.bf16.mxu0 %v3008_v39 }
 0x5ff   :  { %2870 = vmatpush3.bf16.msk.msra.mxu0 %vm3334_vm11, %v3009_v47 }
 0x600   :  { %2871 = vmatprep.subr.bf16.mxu0 %v3008_v39 }
 0x603   :  { %2873 = vmatpush3.bf16.msk.msra.mxu0 %vm3348_vm15, %v3009_v47 }
 0x6b9   :  { %v1676_v18 = vpop.f32.mrb[12].mxu0 }
 0x6ba   :  { %v1680_v2 = vmul.f32 0.001953125, %v1676_v18  ;;  %v2518_v16 = vpop.f32.mrb[13].mxu0 }
 0x6bc   :  { %v1684_v48 = vrot.slane %v1680_v2, %v3406_v7 }
 0x6be   :  { %v1685_v14 = vsub.f32 %v3464_v44, %v1684_v48  ;;  %v1686_v37 = vsub.f32 %v3462_v43, %v1684_v48  ;;  %v1687_v46 = vsub.f32 %v1588_v49, %v1684_v48  ;;  %v1688_v62 = vsub.f32 %v3468_v6, %v1684_v48 }
 0x6c0   :  { %v1689_v51 = vmul.f32 %v1685_v14, %v1685_v14  ;;  %v1690_v63 = vmul.f32 %v1686_v37, %v1686_v37  ;;  %v1691_v0 = vmul.f32 %v1687_v46, %v1687_v46  ;;  %v1692_v3 = vmul.f32 %v1688_v62, %v1688_v62 }
 0x6c2   :  { %v1693_v39 = vadd.f32 %v1690_v63, %v1689_v51 }
 0x6c4   :  { %v1694_v4 = vadd.f32 %v1693_v39, %v1691_v0 }
 0x6c6   :  { %v1695_v54 = vadd.f32 %v1694_v4, %v1692_v3 }
 0x6c8   :  { %v1696_v47 = vrot.slane %v1695_v54, 4 }
 0x6ca   :  { %v1697_v8 = vadd.f32 %v1696_v47, %v1695_v54 }
 0x6cc   :  { %v1698_v11 = vrot.slane %v1697_v8, 2 }
 0x6ce   :  { %v1699_v36 = vadd.f32 %v1698_v11, %v1697_v8 }
 0x6d0   :  { %v1700_v55 = vrot.slane %v1699_v36, 1 }
 0x6d2   :  { %v1701_v58 = vadd.f32 %v1700_v55, %v1699_v36 }
 0x6d4   :  { %2552 = vmatmul.mubr.f32.vlgmr.msra.gmra.mrb[14].mxu0 %v1701_v58 }
 0x7a7   :  { %v1768_v57 = vpop.f32.mrb[14].mxu0 }
 0x7a8   :  { %v1772_v12 = vmul.f32 0.001953125, %v1768_v57  ;;  %v2553_v13 = vpop.f32.mrb[15].mxu0 }
 0x7aa   :  { %v1774_v15 = vadd.f32 1e-05, %v1772_v12 }
 0x7ac   :  { %2902 = vrsqrt.f32 %v1774_v15 }
 0x7b6   :  { %v2903_v20 = vpop.eup %2902 }
 0x7b7   :  { %v1776_v21 = vmul.f32 %v2903_v20, %v1773_v17 }
 0x7b9   :  { %v1778_v23 = vmul.f32 %v1776_v21, %v1680_v2  ;;  %v1784_v24 = vrot.slane %v1776_v21, %v3406_v7 }
 0x7bb   :  { %v1779_v25 = vsub.f32 %v1777_v22, %v1778_v23  ;;  %v1786_v26 = vmul.f32 %v1784_v24, %v3464_v44  ;;  %v1787_v33 = vmul.f32 %v3462_v43, %v1784_v24  ;;  %v1788_v34 = vmul.f32 %v1784_v24, %v1588_v49 }
 0x7bc   :  { %v1789_v9 = vmul.f32 %v3468_v6, %v1784_v24 }
 0x7bd   :  { %v1794_v40 = vrot.slane %v1779_v25, %v3406_v7 }
 0x7bf   :  { %v1796_v10 = vadd.f32 %v1794_v40, %v1786_v26  ;;  %v1797_v1 = vadd.f32 %v1794_v40, %v1787_v33  ;;  %v1798_v41 = vadd.f32 %v1794_v40, %v1788_v34  ;;  %v1799_v27 = vadd.f32 %v1794_v40, %v1789_v9 }
 0x7c1   :  { %v1800_v29 = vadd.f32 %v2904_v28, %v1796_v10  ;;  %v1801_v30 = vadd.f32 %v2905_v45, %v1797_v1  ;;  %v1802_v32 = vadd.f32 %v2906_v31, %v1798_v41  ;;  %v1803_v38 = vadd.f32 %v2907_v35, %v1799_v27 }
 0x7c3   :  { %v1804_v42 = vmax.f32 %v1800_v29, 0.0  ;;  %v1805_v43 = vmax.f32 %v1801_v30, 0.0  ;;  %v1806_v44 = vmax.f32 %v1802_v32, 0.0  ;;  %v1807_v5 = vmax.f32 %v1803_v38, 0.0 }
 0x7c5   :  { %1808 = vst [vmem:[#allocation8] sm:$0xff] %v1804_v42  ;;  %1809 = vst [vmem:[#allocation8 + $0x8] sm:$0xff] %v1805_v43 }
 0x7c6   :  { %1810 = vst [vmem:[#allocation8 + $0x10] sm:$0xff] %v1806_v44  ;;  %1811 = vst [vmem:[#allocation8 + $0x18] sm:$0xff] %v1807_v5 }
 0x7c7   :  { %2985 = shalt.err (!%p2982_p0)
}
 0x7c8   :  { %s2986_s24 = scalar_lea.hbm %s3541_s7, 512 }
 0x7c9   :  { %p2987_p1 = scmp.ne.s32.totalorder %s3541_s7, %s2986_s24  ;;  %p2990_p2 = scmp.lt.u32.totalorder %s2986_s24, %s3541_s7 }
 0x7cb   :  { %p2992_p3 = pnand %p2990_p2, %p2987_p1 }
 0x7cd   :  { %2995 = shalt.err (!%p2992_p3)
}
 0x7ce   :  { %1823 = dma.vmem_to_hbm [thread:$0]  %s1818_s21, 512, %s3541_s7, [#allocation4], %s3004_s13, %s3004_s13, %s3005_s14  }
 0x7cf   :  { %3000 = dma.done.wait [#allocation4], 512  }
 0x7d0   :  { %3001 = vsyncadd [#allocation4], 4294966784 }
 0x7d1   :  { %1827 = vsyncpa [#allocation3], 1 }
 0x7d2   :  { %1828 = vsyncpa [#allocation6], 1 }
 0x7d3   :  { %1829 = vsyncpa [#allocation4], 1 }

</bundles_post_ra>
